<compile_context>
chip_gen: v7x
topology: tpu7x:2x2x1
jax: 0.10.0
libtpu: 0.0.40
codegen_flags: <defaults>
</compile_context>

<pallas_src>
import numpy as np
import jax
import jax.numpy as jnp
from jax.experimental import pallas as pl
from jax.experimental.pallas import tpu as pltpu


def braak_fused_kernel(x_ref, w_ref, b_ref, cw_ref, cb_ref,
                       logits_ref, prob_ref, yhat_ref, s_acc):
    j = pl.program_id(0)

    @pl.when(j == 0)
    def _init():
        s_acc[...] = jnp.zeros_like(s_acc)

    # h = relu(x @ W1T[:, tile] + b1[tile]) with f32 MXU accumulation.
    x_c = x_ref[...].astype(w_ref.dtype)       # in-kernel cast (hidden under weight DMA)
    h = jnp.dot(x_c, w_ref[...], preferred_element_type=jnp.float32)
    h = jnp.maximum(h + b_ref[...], 0.0)

    # Partial CORAL score: sum over this hidden tile of mean_n(h) * coral_w.
    m_tile = jnp.mean(h, axis=0, keepdims=True)                        # (1, tile_n)
    s_acc[...] += jnp.sum(m_tile * cw_ref[...], axis=-1, keepdims=True)  # (1, 1)

    @pl.when(j == pl.num_programs(0) - 1)
    def _finalize():
        logits = s_acc[...] + cb_ref[...]          # (1,1) + (1,K-1) -> (1,K-1)
        prob = jax.nn.sigmoid(logits)
        logits_ref[...] = logits
        prob_ref[...] = prob
        # proba_to_label: count of ordinal thresholds exceeded.
        yhat_ref[...] = jnp.sum((prob > 0.5).astype(jnp.int32),
                                axis=-1, keepdims=True)


def prepare_braak_params(fc_weight, fc_bias, coral_weight, coral_bias,
                         weight_dtype=jnp.bfloat16):
    """One-time parameter preparation (call once at load time, NOT per forward).

    fc_weight:    (H, L) torch nn.Linear layout
    fc_bias:      (H,)
    coral_weight: (1, H) CoralLayer shared weight
    coral_bias:   (K-1,) CoralLayer ordinal biases
    """
    H, L = fc_weight.shape
    w1t = jnp.asarray(fc_weight).T.astype(weight_dtype)              # (L, H), lane-dense
    b_row = jnp.asarray(fc_bias).reshape(1, H).astype(jnp.float32)
    cw_row = jnp.asarray(coral_weight).reshape(1, H).astype(jnp.float32)
    cb_row = jnp.asarray(coral_bias).reshape(1, -1).astype(jnp.float32)
    return w1t, b_row, cw_row, cb_row


def braak_no_attention_forward(x, w1t, b_row, cw_row, cb_row, *, tile_n=None):
    """Returns (logits, Y_prob, Y_hat) matching the PyTorch module forward.

    x: (N, L) f32; w1t: (L, H) bf16 (pre-converted once); b_row/cw_row: (1, H) f32;
    cb_row: (1, K-1) f32.
    """
    N, L = x.shape
    H = w1t.shape[1]
    K1 = cb_row.shape[-1]
    if tile_n is None:
        tile_n = H                      # grid=(1,): single step is optimal at these shapes
    assert H % tile_n == 0, "hidden dim must be a multiple of tile_n"

    logits, y_prob, y_hat_2d = pl.pallas_call(
        braak_fused_kernel,
        out_shape=(
            jax.ShapeDtypeStruct((1, K1), jnp.float32),   # logits
            jax.ShapeDtypeStruct((1, K1), jnp.float32),   # Y_prob
            jax.ShapeDtypeStruct((1, 1), jnp.int32),      # Y_hat (reshaped outside)
        ),
        grid_spec=pltpu.PrefetchScalarGridSpec(
            num_scalar_prefetch=0,
            grid=(H // tile_n,),
            in_specs=[
                pl.BlockSpec((N, L), lambda j: (0, 0)),        # invariant x block
                pl.BlockSpec((L, tile_n), lambda j: (0, j)),   # weight column tile
                pl.BlockSpec((1, tile_n), lambda j: (0, j)),   # bias tile
                pl.BlockSpec((1, tile_n), lambda j: (0, j)),   # coral weight tile
                pl.BlockSpec((1, K1), lambda j: (0, 0)),       # coral bias (invariant)
            ],
            out_specs=[
                pl.BlockSpec((1, K1), lambda j: (0, 0)),
                pl.BlockSpec((1, K1), lambda j: (0, 0)),
                pl.BlockSpec((1, 1), lambda j: (0, 0)),
            ],
            scratch_shapes=[pltpu.VMEM((1, 1), jnp.float32)],  # running CORAL score
        ),
        compiler_params=pltpu.CompilerParams(
            dimension_semantics=("arbitrary",)),   # outputs/accumulator carried across tiles
    )(x, w1t, b_row, cw_row, cb_row)

    return logits, y_prob, y_hat_2d.reshape((1,))


if __name__ == "__main__":
    # Module defaults: size='big' -> [L=2048, 512, 384], n_classes=5.
    # Only size[0] and size[1] are used by the forward (fc + CoralLayer(512, 5)).
    N, L, H, NCLS = 8, 2048, 512, 5
    K1 = NCLS - 1

    key = jax.random.PRNGKey(0)
    kx, kw, kb, kcw, kcb = jax.random.split(key, 5)

    x = jax.random.normal(kx, (N, L), dtype=jnp.float32)
    fc_w = jax.random.normal(kw, (H, L), dtype=jnp.float32) * 0.02     # torch Linear layout
    fc_b = jax.random.normal(kb, (H,), dtype=jnp.float32) * 0.01
    coral_w = jax.random.normal(kcw, (1, H), dtype=jnp.float32) * 0.05
    coral_b = jnp.linspace(1.0, -1.0, K1).astype(jnp.float32)

    # One-time parameter prep: bf16 weight cast hoisted OUT of the per-call path.
    params = jax.block_until_ready(prepare_braak_params(fc_w, fc_b, coral_w, coral_b))

    fwd = jax.jit(braak_no_attention_forward)
    logits, y_prob, y_hat = jax.block_until_ready(fwd(x, *params))

    # Pure-JAX reference at the same compute precision (bf16 matmul, f32 accumulation).
    w1t_f32 = fc_w.T
    h_ref = jnp.maximum(
        jnp.dot(x.astype(jnp.bfloat16), w1t_f32.astype(jnp.bfloat16),
                preferred_element_type=jnp.float32) + fc_b, 0.0)
    M_ref = jnp.mean(h_ref, axis=0)
    logits_ref = (jnp.sum(M_ref * coral_w[0]) + coral_b)[None, :]
    prob_ref = jax.nn.sigmoid(logits_ref)
    yhat_ref = jnp.sum((prob_ref > 0.5).astype(jnp.int32), axis=1)

    assert logits.shape == (1, K1) and y_prob.shape == (1, K1) and y_hat.shape == (1,)
    assert np.allclose(np.asarray(logits), np.asarray(logits_ref), rtol=2e-3, atol=2e-3)
    assert np.allclose(np.asarray(y_prob), np.asarray(prob_ref), rtol=2e-3, atol=2e-3)
    assert np.array_equal(np.asarray(y_hat), np.asarray(yhat_ref))

    # Sanity check against the full-f32 reference (looser tolerance; bf16 weight path).
    # NOTE: if bit-level label parity with the f32 torch model is required, pass
    # weight_dtype=jnp.float32 to prepare_braak_params (weights are only 4 MiB).
    h_f32 = jnp.maximum(x @ w1t_f32 + fc_b, 0.0)
    logits_f32 = (jnp.sum(jnp.mean(h_f32, axis=0) * coral_w[0]) + coral_b)[None, :]
    assert np.allclose(np.asarray(logits), np.asarray(logits_f32), rtol=5e-2, atol=5e-2)

    print("KERNEL_OK")
</pallas_src>

<mosaic_0001>
module attributes {stable_mosaic.version = 11 : i64} {
  func.func @braak_fused_kernel(%arg0: i32, %arg1: memref<8x2048xf32, #tpu.memory_space<vmem>>, %arg2: memref<2048x512xbf16, #tpu.memory_space<vmem>>, %arg3: memref<1x512xf32, #tpu.memory_space<vmem>>, %arg4: memref<1x512xf32, #tpu.memory_space<vmem>>, %arg5: memref<1x4xf32, #tpu.memory_space<vmem>>, %arg6: memref<1x4xf32, #tpu.memory_space<vmem>>, %arg7: memref<1x4xf32, #tpu.memory_space<vmem>>, %arg8: memref<1x1xi32, #tpu.memory_space<vmem>>, %arg9: memref<1x1xf32, #tpu.memory_space<vmem>>) attributes {dimension_semantics = [#tpu.dimension_semantics<arbitrary>], iteration_bounds = array<i64: 1>, scalar_prefetch = 0 : i64, scratch_operands = 1 : i64, tpu.core_type = #tpu.core_type<tc>, window_params = [{pipeline_mode = #tpu.pipeline_mode<synchronous>, transform_indices = @transform_0, window_bounds = array<i64: 8, 2048>}, {transform_indices = @transform_1, window_bounds = array<i64: 2048, 512>}, {transform_indices = @transform_2, window_bounds = array<i64: 1, 512>}, {transform_indices = @transform_3, window_bounds = array<i64: 1, 512>}, {pipeline_mode = #tpu.pipeline_mode<synchronous>, transform_indices = @transform_4, window_bounds = array<i64: 1, 4>}, {pipeline_mode = #tpu.pipeline_mode<synchronous>, transform_indices = @transform_5, window_bounds = array<i64: 1, 4>}, {pipeline_mode = #tpu.pipeline_mode<synchronous>, transform_indices = @transform_6, window_bounds = array<i64: 1, 4>}, {pipeline_mode = #tpu.pipeline_mode<synchronous>, transform_indices = @transform_7, window_bounds = array<i64: 1, 1>}]} {
    %c0_i32 = arith.constant 0 : i32
    %0 = arith.cmpi eq, %arg0, %c0_i32 : i32
    %1 = arith.extui %0 : i1 to i32
    %c0_i32_0 = arith.constant 0 : i32
    %2 = arith.cmpi ne, %1, %c0_i32_0 : i32
    scf.if %2 {
      %cst_18 = arith.constant 0.000000e+00 : f32
      %26 = vector.broadcast %cst_18 : f32 to vector<1x1xf32>
      %c0_19 = arith.constant 0 : index
      %c0_20 = arith.constant 0 : index
      %27 = vector.load %arg9[%c0_19, %c0_20] : memref<1x1xf32, #tpu.memory_space<vmem>>, vector<1x1xf32>
      tpu.vector_store %arg9[%c0_19, %c0_20], %26 {strides = array<i32>} : memref<1x1xf32, #tpu.memory_space<vmem>>, vector<1x1xf32>,
    } else {
    }
    %c0 = arith.constant 0 : index
    %c0_1 = arith.constant 0 : index
    %3 = vector.load %arg1[%c0, %c0_1] : memref<8x2048xf32, #tpu.memory_space<vmem>>, vector<8x2048xf32>
    %4 = arith.truncf %3 : vector<8x2048xf32> to vector<8x2048xbf16>
    %c0_2 = arith.constant 0 : index
    %c0_3 = arith.constant 0 : index
    %5 = vector.load %arg2[%c0_2, %c0_3] : memref<2048x512xbf16, #tpu.memory_space<vmem>>, vector<2048x512xbf16>
    %cst = arith.constant dense<0.000000e+00> : vector<8x512xf32>
    %6 = tpu.matmul %4, %5, %cst {dimension_numbers = #tpu.dot_dimension_numbers<[1], [0], [0], [1], [0, 0, 1, 1], [], []>} : vector<8x2048xbf16>, vector<2048x512xbf16>, vector<8x512xf32> -> vector<8x512xf32>
    %c0_4 = arith.constant 0 : index
    %c0_5 = arith.constant 0 : index
    %7 = vector.load %arg3[%c0_4, %c0_5] : memref<1x512xf32, #tpu.memory_space<vmem>>, vector<1x512xf32>
    %8 = vector.broadcast %7 : vector<1x512xf32> to vector<8x512xf32>
    %9 = arith.addf %6, %8 : vector<8x512xf32>
    %cst_6 = arith.constant 0.000000e+00 : f32
    %10 = vector.broadcast %cst_6 : f32 to vector<8x512xf32>
    %11 = arith.maximumf %9, %10 : vector<8x512xf32>
    %cst_7 = arith.constant dense<0.000000e+00> : vector<512xf32>
    %12 = vector.multi_reduction <add>, %11, %cst_7 [0] : vector<8x512xf32> to vector<512xf32>
    %13 = vector.shape_cast %12 : vector<512xf32> to vector<1x512xf32>
    %cst_8 = arith.constant 8.000000e+00 : f32
    %14 = vector.broadcast %cst_8 : f32 to vector<1x512xf32>
    %15 = arith.divf %13, %14 : vector<1x512xf32>
    %c0_9 = arith.constant 0 : index
    %c0_10 = arith.constant 0 : index
    %16 = vector.load %arg9[%c0_9, %c0_10] : memref<1x1xf32, #tpu.memory_space<vmem>>, vector<1x1xf32>
    %c0_11 = arith.constant 0 : index
    %c0_12 = arith.constant 0 : index
    %17 = vector.load %arg4[%c0_11, %c0_12] : memref<1x512xf32, #tpu.memory_space<vmem>>, vector<1x512xf32>
    %18 = arith.mulf %15, %17 : vector<1x512xf32>
    %cst_13 = arith.constant dense<0.000000e+00> : vector<1xf32>
    %19 = vector.multi_reduction <add>, %18, %cst_13 [1] : vector<1x512xf32> to vector<1xf32>
    %20 = vector.shape_cast %19 : vector<1xf32> to vector<1x1xf32>
    %21 = arith.addf %16, %20 : vector<1x1xf32>
    %c0_14 = arith.constant 0 : index
    %c0_15 = arith.constant 0 : index
    %22 = vector.load %arg9[%c0_14, %c0_15] : memref<1x1xf32, #tpu.memory_space<vmem>>, vector<1x1xf32>
    tpu.vector_store %arg9[%c0_14, %c0_15], %21 {strides = array<i32>} : memref<1x1xf32, #tpu.memory_space<vmem>>, vector<1x1xf32>,
    %c0_i32_16 = arith.constant 0 : i32
    %23 = arith.cmpi eq, %arg0, %c0_i32_16 : i32
    %24 = arith.extui %23 : i1 to i32
    %c0_i32_17 = arith.constant 0 : i32
    %25 = arith.cmpi ne, %24, %c0_i32_17 : i32
    scf.if %25 {
      %c0_18 = arith.constant 0 : index
      %c0_19 = arith.constant 0 : index
      %26 = vector.load %arg9[%c0_18, %c0_19] : memref<1x1xf32, #tpu.memory_space<vmem>>, vector<1x1xf32>
      %c0_20 = arith.constant 0 : index
      %c0_21 = arith.constant 0 : index
      %27 = vector.load %arg5[%c0_20, %c0_21] : memref<1x4xf32, #tpu.memory_space<vmem>>, vector<1x4xf32>
      %28 = vector.broadcast %26 : vector<1x1xf32> to vector<1x4xf32>
      %29 = arith.addf %28, %27 : vector<1x4xf32>
      %30 = arith.negf %29 : vector<1x4xf32>
      %31 = math.exp %30 : vector<1x4xf32>
      %cst_22 = arith.constant 1.000000e+00 : f32
      %32 = vector.broadcast %cst_22 : f32 to vector<1x4xf32>
      %33 = arith.addf %32, %31 : vector<1x4xf32>
      %34 = arith.divf %32, %33 : vector<1x4xf32>
      %c0_23 = arith.constant 0 : index
      %c0_24 = arith.constant 0 : index
      %35 = vector.load %arg6[%c0_23, %c0_24] : memref<1x4xf32, #tpu.memory_space<vmem>>, vector<1x4xf32>
      tpu.vector_store %arg6[%c0_23, %c0_24], %29 {strides = array<i32>} : memref<1x4xf32, #tpu.memory_space<vmem>>, vector<1x4xf32>,
      %c0_25 = arith.constant 0 : index
      %c0_26 = arith.constant 0 : index
      %36 = vector.load %arg7[%c0_25, %c0_26] : memref<1x4xf32, #tpu.memory_space<vmem>>, vector<1x4xf32>
      tpu.vector_store %arg7[%c0_25, %c0_26], %34 {strides = array<i32>} : memref<1x4xf32, #tpu.memory_space<vmem>>, vector<1x4xf32>,
      %cst_27 = arith.constant 5.000000e-01 : f32
      %37 = vector.broadcast %cst_27 : f32 to vector<1x4xf32>
      %38 = arith.cmpf ogt, %34, %37 : vector<1x4xf32>
      %39 = arith.extui %38 : vector<1x4xi1> to vector<1x4xi32>
      %cst_28 = arith.constant dense<0> : vector<1xi32>
      %40 = vector.multi_reduction <add>, %39, %cst_28 [1] : vector<1x4xi32> to vector<1xi32>
      %41 = vector.shape_cast %40 : vector<1xi32> to vector<1x1xi32>
      %c0_29 = arith.constant 0 : index
      %c0_30 = arith.constant 0 : index
      %42 = vector.load %arg8[%c0_29, %c0_30] : memref<1x1xi32, #tpu.memory_space<vmem>>, vector<1x1xi32>
      tpu.vector_store %arg8[%c0_29, %c0_30], %41 {strides = array<i32>} : memref<1x1xi32, #tpu.memory_space<vmem>>, vector<1x1xi32>,
    } else {
    }
    return
  }
  func.func @transform_0(%arg0: i32) -> (i32, i32) {
    %c0_i32 = arith.constant 0 : i32
    %c0_i32_0 = arith.constant 0 : i32
    %c0_i32_1 = arith.constant 0 : i32
    return %c0_i32, %c0_i32_0 : i32, i32
  }
  func.func @transform_1(%arg0: i32) -> (i32, i32) {
    %c0_i32 = arith.constant 0 : i32
    %c0_i32_0 = arith.constant 0 : i32
    return %c0_i32, %arg0 : i32, i32
  }
  func.func @transform_2(%arg0: i32) -> (i32, i32) {
    %c0_i32 = arith.constant 0 : i32
    %c0_i32_0 = arith.constant 0 : i32
    return %c0_i32, %arg0 : i32, i32
  }
  func.func @transform_3(%arg0: i32) -> (i32, i32) {
    %c0_i32 = arith.constant 0 : i32
    %c0_i32_0 = arith.constant 0 : i32
    return %c0_i32, %arg0 : i32, i32
  }
  func.func @transform_4(%arg0: i32) -> (i32, i32) {
    %c0_i32 = arith.constant 0 : i32
    %c0_i32_0 = arith.constant 0 : i32
    %c0_i32_1 = arith.constant 0 : i32
    return %c0_i32, %c0_i32_0 : i32, i32
  }
  func.func @transform_5(%arg0: i32) -> (i32, i32) {
    %c0_i32 = arith.constant 0 : i32
    %c0_i32_0 = arith.constant 0 : i32
    %c0_i32_1 = arith.constant 0 : i32
    return %c0_i32, %c0_i32_0 : i32, i32
  }
  func.func @transform_6(%arg0: i32) -> (i32, i32) {
    %c0_i32 = arith.constant 0 : i32
    %c0_i32_0 = arith.constant 0 : i32
    %c0_i32_1 = arith.constant 0 : i32
    return %c0_i32, %c0_i32_0 : i32, i32
  }
  func.func @transform_7(%arg0: i32) -> (i32, i32) {
    %c0_i32 = arith.constant 0 : i32
    %c0_i32_0 = arith.constant 0 : i32
    %c0_i32_1 = arith.constant 0 : i32
    return %c0_i32, %c0_i32_0 : i32, i32
  }
}

</mosaic_0001>

<bundles_post_ra>
// kernel: braak_no_attention_forward.1
= control target key start
LH: loop header
LB: loop body
LE: loop exit
PB: predicated region body
PF: predicated region fallthrough
CT: control target
= control target key end

     0   :  { %13 = vsyncpa [#allocation4], 0  ;;  %s5730_s0 = inlined_call_operand.hbm [shape: f32[8,2048], index: 0, kind: input, shape index: {}]   ;;  %s5731_s1 = inlined_call_operand.hbm [shape: bf16[2048,512], index: 1, kind: input, shape index: {}]   ;;  %s5732_s2 = inlined_call_operand.hbm [shape: f32[1,512], index: 2, kind: input, shape index: {}]   ;;  %s5733_s3 = inlined_call_operand.hbm [shape: f32[1,512], index: 3, kind: input, shape index: {}]   ;;  %s5734_s4 = inlined_call_operand.hbm [shape: f32[1,4], index: 4, kind: input, shape index: {}]   ;;  %s5735_s5 = inlined_call_operand.hbm [shape: f32[1,4], index: 5, kind: output, shape index: {0}]   ;;  %s5736_s6 = inlined_call_operand.hbm [shape: f32[1,4], index: 6, kind: output, shape index: {1}]   ;;  %s5737_s7 = inlined_call_operand.hbm [shape: s32[1,1], index: 7, kind: output, shape index: {2}]  }
   0x1   :  { %14 = vsyncpa [#allocation7], 0 }
   0x2   :  { %15 = vsyncpa [#allocation10], 0 }
   0x3   :  { %16 = vsyncpa [#allocation5], 0 }
   0x4   :  { %17 = vsyncpa [#allocation14], 0  ;;  %s5574_s24 = smov [#allocation6]   ;;  %s5388_s28 = scalar_lea.hbm %s5731_s1, 65536 }
   0x5   :  { %s33_s25 = sshll.u32 %s5574_s24, 4  ;;  %p5389_p0 = scmp.ne.s32.totalorder %s5731_s1, %s5388_s28  ;;  %s34_s25 = int_to_ptr.vmem [resolvable:$true] %s33_s25 }
   0x6   :  { %p5392_p1 = scmp.lt.u32.totalorder %s5388_s28, %s5731_s1 }
   0x8   :  { %p5394_p2 = pnand %p5392_p1, %p5389_p0 }
   0xa   :  { %5397 = shalt.err (!%p5394_p2)
}
   0xb   :  { %s5398_s10 = scalar_lea.vmem %s34_s25, 65536  ;;  %p5403_p4 = scmp.lt.s32.totalorder %s34_s25, %s34_s25 }
   0xc   :  { %p5399_p3 = scmp.ne.s32.totalorder %s34_s25, %s5398_s10  ;;  %p5404_p5 = scmp.lt.s32.totalorder %s5398_s10, %s5398_s10 }
   0xe   :  { %p5405_p6 = por %p5404_p5, %p5403_p4 }
  0x10   :  { %p5406_p7 = pnand %p5405_p6, %p5399_p3 }
  0x12   :  { %5409 = shalt.err (!%p5406_p7)
}
  0x13   :  { %s5575_s11 = smov 256   ;;  %s5576_s12 = smov 16  }
  0x14   :  { %39 = dma.hbm_to_vmem [thread:$0]  %s5731_s1, 65536, %s34_s25, [#allocation7], %s5575_s11, %s5575_s11, %s5576_s12  }
  0x15   :  { %s5577_s15 = smov [#allocation9]   ;;  %s5578_s17 = smov [#allocation3]  }
  0x16   :  { %s56_s16 = sshll.u32 %s5577_s15, 4  ;;  %s24_s18 = sshll.u32 %s5578_s17, 4  ;;  %s57_s16 = int_to_ptr.vmem [resolvable:$true] %s56_s16  ;;  %s25_s18 = int_to_ptr.vmem [resolvable:$true] %s24_s18 }
  0x17   :  { %s5410_s21 = scalar_lea.hbm %s5733_s3, 64 }
  0x18   :  { %p5411_p8 = scmp.ne.s32.totalorder %s5733_s3, %s5410_s21  ;;  %p5414_p9 = scmp.lt.u32.totalorder %s5410_s21, %s5733_s3 }
  0x1a   :  { %p5416_p10 = pnand %p5414_p9, %p5411_p8 }
  0x1c   :  { %5419 = shalt.err (!%p5416_p10)
}
  0x1d   :  { %s5420_s1 = scalar_lea.vmem %s57_s16, 64  ;;  %p5425_p12 = scmp.lt.s32.totalorder %s57_s16, %s57_s16 }
  0x1e   :  { %p5421_p11 = scmp.ne.s32.totalorder %s57_s16, %s5420_s1  ;;  %p5426_p13 = scmp.lt.s32.totalorder %s5420_s1, %s5420_s1 }
  0x20   :  { %p5427_p0 = por %p5426_p13, %p5425_p12 }
  0x22   :  { %p5428_p1 = pnand %p5427_p0, %p5421_p11 }
  0x24   :  { %5431 = shalt.err (!%p5428_p1)
}
  0x25   :  { %59 = dma.hbm_to_vmem [thread:$0]  %s5733_s3, 64, %s57_s16, [#allocation10]  }
  0x26   :  { %s5432_s30 = scalar_lea.hbm %s5730_s0, 2048 }
  0x27   :  { %p5433_p2 = scmp.ne.s32.totalorder %s5730_s0, %s5432_s30  ;;  %p5436_p3 = scmp.lt.u32.totalorder %s5432_s30, %s5730_s0 }
  0x29   :  { %p5438_p4 = pnand %p5436_p3, %p5433_p2 }
  0x2b   :  { %5441 = shalt.err (!%p5438_p4)
}
  0x2c   :  { %s5442_s12 = scalar_lea.vmem %s25_s18, 2048  ;;  %p5447_p6 = scmp.lt.s32.totalorder %s25_s18, %s25_s18 }
  0x2d   :  { %p5443_p5 = scmp.ne.s32.totalorder %s25_s18, %s5442_s12  ;;  %p5448_p7 = scmp.lt.s32.totalorder %s5442_s12, %s5442_s12 }
  0x2f   :  { %p5449_p8 = por %p5448_p7, %p5447_p6 }
  0x31   :  { %p5450_p9 = pnand %p5449_p8, %p5443_p5 }
  0x33   :  { %5453 = shalt.err (!%p5450_p9)
}
  0x34   :  { %27 = dma.hbm_to_vmem [thread:$0]  %s5730_s0, 2048, %s25_s18, [#allocation4]  }
  0x35   :  { %s5579_s14 = smov [#allocation8]   ;;  %s5580_s16 = smov [#allocation11]  }
  0x36   :  { %s46_s15 = sshll.u32 %s5579_s14, 4  ;;  %s66_s17 = sshll.u32 %s5580_s16, 4  ;;  %s47_s15 = int_to_ptr.vmem [resolvable:$true] %s46_s15  ;;  %s67_s17 = int_to_ptr.vmem [resolvable:$true] %s66_s17 }
  0x37   :  { %s5454_s21 = scalar_lea.hbm %s5732_s2, 64 }
  0x38   :  { %p5455_p10 = scmp.ne.s32.totalorder %s5732_s2, %s5454_s21  ;;  %p5458_p11 = scmp.lt.u32.totalorder %s5454_s21, %s5732_s2 }
  0x3a   :  { %p5460_p12 = pnand %p5458_p11, %p5455_p10 }
  0x3c   :  { %5463 = shalt.err (!%p5460_p12)
}
  0x3d   :  { %s5464_s0 = scalar_lea.vmem %s47_s15, 64  ;;  %p5469_p0 = scmp.lt.s32.totalorder %s47_s15, %s47_s15 }
  0x3e   :  { %p5465_p13 = scmp.ne.s32.totalorder %s47_s15, %s5464_s0  ;;  %p5470_p1 = scmp.lt.s32.totalorder %s5464_s0, %s5464_s0 }
  0x40   :  { %p5471_p2 = por %p5470_p1, %p5469_p0 }
  0x42   :  { %p5472_p3 = pnand %p5471_p2, %p5465_p13 }
  0x44   :  { %5475 = shalt.err (!%p5472_p3)
}
  0x45   :  { %49 = dma.hbm_to_vmem [thread:$0]  %s5732_s2, 64, %s47_s15, [#allocation7]  }
  0x46   :  { %s5476_s28 = scalar_lea.hbm %s5734_s4, 16 }
  0x47   :  { %p5477_p4 = scmp.ne.s32.totalorder %s5734_s4, %s5476_s28  ;;  %p5480_p5 = scmp.lt.u32.totalorder %s5476_s28, %s5734_s4 }
  0x49   :  { %p5482_p6 = pnand %p5480_p5, %p5477_p4 }
  0x4b   :  { %5485 = shalt.err (!%p5482_p6)
}
  0x4c   :  { %s5486_s10 = scalar_lea.vmem %s67_s17, 16  ;;  %s5490_s11 = scalar_lea.vmem %s67_s17, 32 }
  0x4d   :  { %p5487_p7 = scmp.ne.s32.totalorder %s67_s17, %s5486_s10  ;;  %p5491_p8 = scmp.lt.s32.totalorder %s67_s17, %s67_s17 }
  0x4e   :  { %p5492_p9 = scmp.lt.s32.totalorder %s5490_s11, %s5486_s10 }
  0x50   :  { %p5493_p10 = por %p5492_p9, %p5491_p8 }
  0x52   :  { %p5494_p11 = pnand %p5493_p10, %p5487_p7 }
  0x54   :  { %5497 = shalt.err (!%p5494_p11)
}
  0x55   :  { %69 = dma.hbm_to_vmem [thread:$0]  %s5734_s4, 16, %s67_s17, [#allocation10]  }
  0x56   :  { %5564 = dma.done.wait [#allocation4], 2048  }
  0x57   :  { %5565 = vsyncadd [#allocation4], 4294965248 }
  0x58   :  { %5566 = dma.done.wait [#allocation7], 65600  }
  0x59   :  { %5567 = vsyncadd [#allocation7], 4294901696 }
  0x5a   :  { %5568 = dma.done.wait [#allocation10], 80  }
  0x5b   :  { %5569 = vsyncadd [#allocation10], 4294967216  ;;  %v4616_v0 = vld [vmem:[#allocation6 + $0x4] ss:$16 sps:$4 sm:$0xff]   ;;  %v4618_v1 = vld [vmem:[#allocation6 + $0xc] ss:$16 sps:$4 sm:$0xff]  }
  0x5c   :  { %3217 = vmatprep.subr.bf16.mxu0 %v4616_v0  ;;  %v4620_v2 = vld [vmem:[#allocation6] ss:$16 sps:$4 sm:$0xff]   ;;  %v4621_v3 = vld [vmem:[#allocation6 + $0x8] ss:$16 sps:$4 sm:$0xff]   ;;  %3545 = vmatprep.subr.bf16.mxu1 %v4618_v1  ;;  %v4622_v4 = vld [vmem:[#allocation6 + $0x24] ss:$16 sps:$4 sm:$0xff]  }
  0x5d   :  { %3218 = vmatpush1.bf16.msra.mxu0 %v4620_v2  ;;  %3546 = vmatpush1.bf16.msra.mxu1 %v4621_v3  ;;  %v4624_v5 = vld [vmem:[#allocation6 + $0x2c] ss:$16 sps:$4 sm:$0xff]   ;;  %v4626_v6 = vld [vmem:[#allocation6 + $0x20] ss:$16 sps:$4 sm:$0xff]   ;;  %v4627_v7 = vld [vmem:[#allocation6 + $0x28] ss:$16 sps:$4 sm:$0xff]  }
  0x5e   :  { %3219 = vmatprep.subr.bf16.mxu0 %v4622_v4  ;;  %3547 = vmatprep.subr.bf16.mxu1 %v4624_v5  ;;  %v4628_v8 = vld [vmem:[#allocation6 + $0x44] ss:$16 sps:$4 sm:$0xff]   ;;  %v4630_v9 = vld [vmem:[#allocation6 + $0x4c] ss:$16 sps:$4 sm:$0xff]   ;;  %v4632_v10 = vld [vmem:[#allocation6 + $0x40] ss:$16 sps:$4 sm:$0xff]  }
  0x5f   :  { %v4633_v11 = vld [vmem:[#allocation6 + $0x48] ss:$16 sps:$4 sm:$0xff]   ;;  %v4634_v12 = vld [vmem:[#allocation6 + $0x64] ss:$16 sps:$4 sm:$0xff]   ;;  %v4636_v13 = vld [vmem:[#allocation6 + $0x6c] ss:$16 sps:$4 sm:$0xff]  }
  0x60   :  { %v4638_v14 = vld [vmem:[#allocation6 + $0x60] ss:$16 sps:$4 sm:$0xff]   ;;  %v4639_v15 = vld [vmem:[#allocation6 + $0x68] ss:$16 sps:$4 sm:$0xff]   ;;  %v4640_v16 = vld [vmem:[#allocation6 + $0x84] ss:$16 sps:$4 sm:$0xff]  }
  0x61   :  { %3220 = vmatpush1.bf16.msra.mxu0 %v4626_v6  ;;  %3548 = vmatpush1.bf16.msra.mxu1 %v4627_v7  ;;  %v4642_v17 = vld [vmem:[#allocation6 + $0x8c] ss:$16 sps:$4 sm:$0xff]   ;;  %v4644_v18 = vld [vmem:[#allocation6 + $0x80] ss:$16 sps:$4 sm:$0xff]   ;;  %v4645_v19 = vld [vmem:[#allocation6 + $0x88] ss:$16 sps:$4 sm:$0xff]  }
  0x62   :  { %3221 = vmatprep.subr.bf16.mxu0 %v4628_v8  ;;  %3549 = vmatprep.subr.bf16.mxu1 %v4630_v9  ;;  %v4646_v20 = vld [vmem:[#allocation6 + $0xa4] ss:$16 sps:$4 sm:$0xff]   ;;  %v4648_v21 = vld [vmem:[#allocation6 + $0xac] ss:$16 sps:$4 sm:$0xff]   ;;  %v4650_v22 = vld [vmem:[#allocation6 + $0xa0] ss:$16 sps:$4 sm:$0xff]  }
  0x63   :  { %v4651_v23 = vld [vmem:[#allocation6 + $0xa8] ss:$16 sps:$4 sm:$0xff]   ;;  %v4652_v24 = vld [vmem:[#allocation6 + $0xc4] ss:$16 sps:$4 sm:$0xff]   ;;  %v4654_v25 = vld [vmem:[#allocation6 + $0xcc] ss:$16 sps:$4 sm:$0xff]  }
  0x64   :  { %v4656_v26 = vld [vmem:[#allocation6 + $0xc0] ss:$16 sps:$4 sm:$0xff]   ;;  %v4657_v27 = vld [vmem:[#allocation6 + $0xc8] ss:$16 sps:$4 sm:$0xff]   ;;  %v4658_v28 = vld [vmem:[#allocation6 + $0xe4] ss:$16 sps:$4 sm:$0xff]  }
  0x65   :  { %3222 = vmatpush1.bf16.msra.mxu0 %v4632_v10  ;;  %3550 = vmatpush1.bf16.msra.mxu1 %v4633_v11  ;;  %v4660_v29 = vld [vmem:[#allocation6 + $0xec] ss:$16 sps:$4 sm:$0xff]   ;;  %v4662_v30 = vld [vmem:[#allocation6 + $0xe0] ss:$16 sps:$4 sm:$0xff]   ;;  %v4663_v31 = vld [vmem:[#allocation6 + $0xe8] ss:$16 sps:$4 sm:$0xff]  }
  0x66   :  { %3223 = vmatprep.subr.bf16.mxu0 %v4634_v12  ;;  %3551 = vmatprep.subr.bf16.mxu1 %v4636_v13  ;;  %v4664_v32 = vld [vmem:[#allocation6 + $0x104] ss:$16 sps:$4 sm:$0xff]   ;;  %v4666_v33 = vld [vmem:[#allocation6 + $0x10c] ss:$16 sps:$4 sm:$0xff]   ;;  %v4668_v34 = vld [vmem:[#allocation6 + $0x100] ss:$16 sps:$4 sm:$0xff]  }
  0x67   :  { %v4669_v35 = vld [vmem:[#allocation6 + $0x108] ss:$16 sps:$4 sm:$0xff]   ;;  %v4670_v36 = vld [vmem:[#allocation6 + $0x124] ss:$16 sps:$4 sm:$0xff]   ;;  %v4672_v37 = vld [vmem:[#allocation6 + $0x12c] ss:$16 sps:$4 sm:$0xff]  }
  0x68   :  { %v4674_v38 = vld [vmem:[#allocation6 + $0x120] ss:$16 sps:$4 sm:$0xff]   ;;  %v4675_v39 = vld [vmem:[#allocation6 + $0x128] ss:$16 sps:$4 sm:$0xff]   ;;  %v4676_v40 = vld [vmem:[#allocation6 + $0x144] ss:$16 sps:$4 sm:$0xff]  }
  0x69   :  { %3224 = vmatpush1.bf16.msra.mxu0 %v4638_v14  ;;  %3552 = vmatpush1.bf16.msra.mxu1 %v4639_v15  ;;  %v4678_v41 = vld [vmem:[#allocation6 + $0x14c] ss:$16 sps:$4 sm:$0xff]   ;;  %v4680_v42 = vld [vmem:[#allocation6 + $0x140] ss:$16 sps:$4 sm:$0xff]   ;;  %v4681_v43 = vld [vmem:[#allocation6 + $0x148] ss:$16 sps:$4 sm:$0xff]  }
  0x6a   :  { %3225 = vmatprep.subr.bf16.mxu0 %v4640_v16  ;;  %3553 = vmatprep.subr.bf16.mxu1 %v4642_v17  ;;  %v4682_v44 = vld [vmem:[#allocation6 + $0x164] ss:$16 sps:$4 sm:$0xff]   ;;  %v4684_v45 = vld [vmem:[#allocation6 + $0x16c] ss:$16 sps:$4 sm:$0xff]   ;;  %v4686_v47 = vld [vmem:[#allocation6 + $0x160] ss:$16 sps:$4 sm:$0xff]  }
  0x6b   :  { %v92_v46 = vld [vmem:[#allocation3 + $0x8] sm:$0xff]  ;;  %v4688_v50 = vld [vmem:[#allocation6 + $0x184] ss:$16 sps:$4 sm:$0xff]   ;;  %v4692_v52 = vld [vmem:[#allocation6 + $0x180] ss:$16 sps:$4 sm:$0xff]   ;;  %vm89_vm0 = vcmask 0  }
  0x6c   :  { %v108_v48 = vpack.c.bf16 %v92_v46, %v92_v46  ;;  %v4687_v49 = vld [vmem:[#allocation6 + $0x168] ss:$16 sps:$4 sm:$0xff]   ;;  %v4690_v51 = vld [vmem:[#allocation6 + $0x18c] ss:$16 sps:$4 sm:$0xff]   ;;  %v4694_v54 = vld [vmem:[#allocation6 + $0x1a4] ss:$16 sps:$4 sm:$0xff]  }
  0x6d   :  { %3226 = vmatpush1.bf16.msra.mxu0 %v4644_v18  ;;  %3554 = vmatpush1.bf16.msra.mxu1 %v4645_v19  ;;  %v4693_v53 = vld [vmem:[#allocation6 + $0x188] ss:$16 sps:$4 sm:$0xff]   ;;  %v4696_v55 = vld [vmem:[#allocation6 + $0x1ac] ss:$16 sps:$4 sm:$0xff]   ;;  %v4698_v56 = vld [vmem:[#allocation6 + $0x1a0] ss:$16 sps:$4 sm:$0xff]  }
  0x6e   :  { %3227 = vmatprep.subr.bf16.mxu0 %v4646_v20  ;;  %3555 = vmatprep.subr.bf16.mxu1 %v4648_v21  ;;  %v4699_v57 = vld [vmem:[#allocation6 + $0x1a8] ss:$16 sps:$4 sm:$0xff]   ;;  %v4700_v58 = vld [vmem:[#allocation6 + $0x1c4] ss:$16 sps:$4 sm:$0xff]   ;;  %v4702_v59 = vld [vmem:[#allocation6 + $0x1cc] ss:$16 sps:$4 sm:$0xff]  }
  0x6f   :  { %3249 = vmatprep.mubr.bf16.mxu0 %v108_v48  ;;  %3577 = vmatprep.mubr.bf16.mxu1 %v108_v48  ;;  %v4704_v60 = vld [vmem:[#allocation6 + $0x1c0] ss:$16 sps:$4 sm:$0xff]   ;;  %v4705_v61 = vld [vmem:[#allocation6 + $0x1c8] ss:$16 sps:$4 sm:$0xff]   ;;  %v4706_v62 = vld [vmem:[#allocation6 + $0x1e4] ss:$16 sps:$4 sm:$0xff]  }
  0x70   :  { %v4708_v63 = vld [vmem:[#allocation6 + $0x1ec] ss:$16 sps:$4 sm:$0xff]   ;;  %v4710_v0 = vld [vmem:[#allocation6 + $0x1e0] ss:$16 sps:$4 sm:$0xff]   ;;  %v4711_v1 = vld [vmem:[#allocation6 + $0x1e8] ss:$16 sps:$4 sm:$0xff]  }
  0x71   :  { %3228 = vmatpush1.bf16.msra.mxu0 %v4650_v22  ;;  %3556 = vmatpush1.bf16.msra.mxu1 %v4651_v23  ;;  %v91_v2 = vld [vmem:[#allocation3] sm:$0xff]  ;;  %v4717_v4 = vld [vmem:[#allocation6 + $0x20c] ss:$16 sps:$4 sm:$0xff]   ;;  %v4715_v7 = vld [vmem:[#allocation6 + $0x208] ss:$16 sps:$4 sm:$0xff]   ;;  %vm3933_vm1 = vcmask 1040384  }
  0x72   :  { %3229 = vmatprep.subr.bf16.mxu0 %v4652_v24  ;;  %3557 = vmatprep.subr.bf16.mxu1 %v4654_v25  ;;  %v4714_v3 = vld [vmem:[#allocation6 + $0x204] ss:$16 sps:$4 sm:$0xff]   ;;  %v107_v5 = vpack.c.bf16 %v91_v2, %v91_v2  ;;  %v4712_v6 = vld [vmem:[#allocation6 + $0x200] ss:$16 sps:$4 sm:$0xff]   ;;  %v4723_v9 = vld [vmem:[#allocation6 + $0x22c] ss:$16 sps:$4 sm:$0xff]  }
  0x73   :  { %v4720_v8 = vld [vmem:[#allocation6 + $0x224] ss:$16 sps:$4 sm:$0xff]   ;;  %v4718_v10 = vld [vmem:[#allocation6 + $0x220] ss:$16 sps:$4 sm:$0xff]   ;;  %v4721_v11 = vld [vmem:[#allocation6 + $0x228] ss:$16 sps:$4 sm:$0xff]  }
  0x74   :  { %v4726_v12 = vld [vmem:[#allocation6 + $0x244] ss:$16 sps:$4 sm:$0xff]   ;;  %v4729_v13 = vld [vmem:[#allocation6 + $0x24c] ss:$16 sps:$4 sm:$0xff]   ;;  %v4724_v14 = vld [vmem:[#allocation6 + $0x240] ss:$16 sps:$4 sm:$0xff]  }
  0x75   :  { %3230 = vmatpush1.bf16.msra.mxu0 %v4656_v26  ;;  %3558 = vmatpush1.bf16.msra.mxu1 %v4657_v27  ;;  %v4727_v15 = vld [vmem:[#allocation6 + $0x248] ss:$16 sps:$4 sm:$0xff]   ;;  %v4732_v16 = vld [vmem:[#allocation6 + $0x264] ss:$16 sps:$4 sm:$0xff]   ;;  %v4735_v17 = vld [vmem:[#allocation6 + $0x26c] ss:$16 sps:$4 sm:$0xff]  }
  0x76   :  { %3231 = vmatprep.subr.bf16.mxu0 %v4658_v28  ;;  %3559 = vmatprep.subr.bf16.mxu1 %v4660_v29  ;;  %v4730_v18 = vld [vmem:[#allocation6 + $0x260] ss:$16 sps:$4 sm:$0xff]   ;;  %v4733_v19 = vld [vmem:[#allocation6 + $0x268] ss:$16 sps:$4 sm:$0xff]   ;;  %v4738_v20 = vld [vmem:[#allocation6 + $0x284] ss:$16 sps:$4 sm:$0xff]  }
  0x77   :  { %v4741_v21 = vld [vmem:[#allocation6 + $0x28c] ss:$16 sps:$4 sm:$0xff]   ;;  %v4736_v22 = vld [vmem:[#allocation6 + $0x280] ss:$16 sps:$4 sm:$0xff]   ;;  %v4739_v23 = vld [vmem:[#allocation6 + $0x288] ss:$16 sps:$4 sm:$0xff]  }
  0x78   :  { %v4744_v24 = vld [vmem:[#allocation6 + $0x2a4] ss:$16 sps:$4 sm:$0xff]   ;;  %v4747_v25 = vld [vmem:[#allocation6 + $0x2ac] ss:$16 sps:$4 sm:$0xff]   ;;  %v4742_v26 = vld [vmem:[#allocation6 + $0x2a0] ss:$16 sps:$4 sm:$0xff]  }
  0x79   :  { %3232 = vmatpush1.bf16.msra.mxu0 %v4662_v30  ;;  %3560 = vmatpush1.bf16.msra.mxu1 %v4663_v31  ;;  %v4745_v27 = vld [vmem:[#allocation6 + $0x2a8] ss:$16 sps:$4 sm:$0xff]   ;;  %v4750_v28 = vld [vmem:[#allocation6 + $0x2c4] ss:$16 sps:$4 sm:$0xff]   ;;  %v4753_v29 = vld [vmem:[#allocation6 + $0x2cc] ss:$16 sps:$4 sm:$0xff]  }
  0x7a   :  { %3233 = vmatprep.subr.bf16.mxu0 %v4664_v32  ;;  %3561 = vmatprep.subr.bf16.mxu1 %v4666_v33  ;;  %v94_v30 = vld [vmem:[#allocation3 + $0x18] sm:$0xff]  ;;  %v4748_v31 = vld [vmem:[#allocation6 + $0x2c0] ss:$16 sps:$4 sm:$0xff]   ;;  %v4774_v46 = vld [vmem:[#allocation6 + $0x344] ss:$16 sps:$4 sm:$0xff]   ;;  %vm3967_vm2 = vcmask 24576  }
  0x7b   :  { %v110_v32 = vpack.c.bf16 %v94_v30, %v94_v30  ;;  %v4751_v33 = vld [vmem:[#allocation6 + $0x2c8] ss:$16 sps:$4 sm:$0xff]   ;;  %v4772_v48 = vld [vmem:[#allocation6 + $0x340] ss:$16 sps:$4 sm:$0xff]   ;;  %v4804_v2 = vld [vmem:[#allocation6 + $0x3e4] ss:$16 sps:$4 sm:$0xff]  }
  0x7c   :  { %v4840_v30 = vld [vmem:[#allocation6 + $0x4a4] ss:$16 sps:$4 sm:$0xff]   ;;  %s5583_s4 = smov [#allocation13]   ;;  %s5584_s13 = smov [#allocation12]  }
  0x7d   :  { %3234 = vmatpush1.bf16.msra.mxu0 %v4668_v34  ;;  %3562 = vmatpush1.bf16.msra.mxu1 %v4669_v35  ;;  %v4756_v34 = vld [vmem:[#allocation6 + $0x2e4] ss:$16 sps:$4 sm:$0xff]   ;;  %v4759_v35 = vld [vmem:[#allocation6 + $0x2ec] ss:$16 sps:$4 sm:$0xff]   ;;  %s4002_s3 = sshll.u32 %s5583_s4, 4  ;;  %s3992_s14 = sshll.u32 %s5584_s13, 4  ;;  %s4003_s3 = int_to_ptr.vmem [resolvable:$true] %s4002_s3  ;;  %s3993_s14 = int_to_ptr.vmem [resolvable:$true] %s3992_s14 }
  0x7e   :  { %3235 = vmatprep.subr.bf16.mxu0 %v4670_v36  ;;  %3563 = vmatprep.subr.bf16.mxu1 %v4672_v37  ;;  %v4754_v36 = vld [vmem:[#allocation6 + $0x2e0] ss:$16 sps:$4 sm:$0xff]   ;;  %v4757_v37 = vld [vmem:[#allocation6 + $0x2e8] ss:$16 sps:$4 sm:$0xff]   ;;  %s5498_s15 = scalar_lea.vmem %s4003_s3, 16  ;;  %s5502_s16 = scalar_lea.vmem %s4003_s3, 32 }
  0x7f   :  { %p5499_p12 = scmp.ne.s32.totalorder %s4003_s3, %s5498_s15  ;;  %p5503_p13 = scmp.lt.s32.totalorder %s4003_s3, %s4003_s3 }
  0x80   :  { %p5504_p0 = scmp.lt.s32.totalorder %s5502_s16, %s5498_s15 }
  0x81   :  { %3236 = vmatpush1.bf16.msra.mxu0 %v4674_v38  ;;  %3564 = vmatpush1.bf16.msra.mxu1 %v4675_v39  ;;  %v4762_v38 = vld [vmem:[#allocation6 + $0x304] ss:$16 sps:$4 sm:$0xff]   ;;  %v4765_v39 = vld [vmem:[#allocation6 + $0x30c] ss:$16 sps:$4 sm:$0xff]  }
  0x82   :  { %3237 = vmatprep.subr.bf16.mxu0 %v4676_v40  ;;  %3565 = vmatprep.subr.bf16.mxu1 %v4678_v41  ;;  %v4760_v40 = vld [vmem:[#allocation6 + $0x300] ss:$16 sps:$4 sm:$0xff]   ;;  %v4763_v41 = vld [vmem:[#allocation6 + $0x308] ss:$16 sps:$4 sm:$0xff]   ;;  %p5505_p1 = por %p5504_p0, %p5503_p13 }
  0x84   :  { %p5506_p2 = pnand %p5505_p1, %p5499_p12 }
  0x85   :  { %3238 = vmatpush1.bf16.msra.mxu0 %v4680_v42  ;;  %3566 = vmatpush1.bf16.msra.mxu1 %v4681_v43  ;;  %v4768_v42 = vld [vmem:[#allocation6 + $0x324] ss:$16 sps:$4 sm:$0xff]   ;;  %v4771_v43 = vld [vmem:[#allocation6 + $0x32c] ss:$16 sps:$4 sm:$0xff]  }
  0x86   :  { %3239 = vmatprep.subr.bf16.mxu0 %v4682_v44  ;;  %3567 = vmatprep.subr.bf16.mxu1 %v4684_v45  ;;  %v4766_v44 = vld [vmem:[#allocation6 + $0x320] ss:$16 sps:$4 sm:$0xff]   ;;  %v4769_v45 = vld [vmem:[#allocation6 + $0x328] ss:$16 sps:$4 sm:$0xff]  }
  0x89   :  { %3240 = vmatpush1.bf16.msra.mxu0 %v4686_v47  ;;  %3568 = vmatpush1.bf16.msra.mxu1 %v4687_v49  ;;  %v4777_v47 = vld [vmem:[#allocation6 + $0x34c] ss:$16 sps:$4 sm:$0xff]   ;;  %v4775_v49 = vld [vmem:[#allocation6 + $0x348] ss:$16 sps:$4 sm:$0xff]  }
  0x8a   :  { %3241 = vmatprep.subr.bf16.mxu0 %v4688_v50  ;;  %3569 = vmatprep.subr.bf16.mxu1 %v4690_v51  ;;  %v4780_v50 = vld [vmem:[#allocation6 + $0x364] ss:$16 sps:$4 sm:$0xff]   ;;  %v4783_v51 = vld [vmem:[#allocation6 + $0x36c] ss:$16 sps:$4 sm:$0xff]  }
  0x8d   :  { %3242 = vmatpush1.bf16.msra.mxu0 %v4692_v52  ;;  %3570 = vmatpush1.bf16.msra.mxu1 %v4693_v53  ;;  %v4778_v52 = vld [vmem:[#allocation6 + $0x360] ss:$16 sps:$4 sm:$0xff]   ;;  %v4781_v53 = vld [vmem:[#allocation6 + $0x368] ss:$16 sps:$4 sm:$0xff]  }
  0x8e   :  { %3243 = vmatprep.subr.bf16.mxu0 %v4694_v54  ;;  %3571 = vmatprep.subr.bf16.mxu1 %v4696_v55  ;;  %v4786_v54 = vld [vmem:[#allocation6 + $0x384] ss:$16 sps:$4 sm:$0xff]   ;;  %v4789_v55 = vld [vmem:[#allocation6 + $0x38c] ss:$16 sps:$4 sm:$0xff]  }
  0x91   :  { %3244 = vmatpush1.bf16.msra.mxu0 %v4698_v56  ;;  %3572 = vmatpush1.bf16.msra.mxu1 %v4699_v57  ;;  %v4784_v56 = vld [vmem:[#allocation6 + $0x380] ss:$16 sps:$4 sm:$0xff]   ;;  %v4787_v57 = vld [vmem:[#allocation6 + $0x388] ss:$16 sps:$4 sm:$0xff]  }
  0x92   :  { %3245 = vmatprep.subr.bf16.mxu0 %v4700_v58  ;;  %3573 = vmatprep.subr.bf16.mxu1 %v4702_v59  ;;  %v4792_v58 = vld [vmem:[#allocation6 + $0x3a4] ss:$16 sps:$4 sm:$0xff]   ;;  %v4795_v59 = vld [vmem:[#allocation6 + $0x3ac] ss:$16 sps:$4 sm:$0xff]  }
  0x95   :  { %3246 = vmatpush1.bf16.msra.mxu0 %v4704_v60  ;;  %3574 = vmatpush1.bf16.msra.mxu1 %v4705_v61  ;;  %v4790_v60 = vld [vmem:[#allocation6 + $0x3a0] ss:$16 sps:$4 sm:$0xff]   ;;  %v4793_v61 = vld [vmem:[#allocation6 + $0x3a8] ss:$16 sps:$4 sm:$0xff]  }
  0x96   :  { %3247 = vmatprep.subr.bf16.mxu0 %v4706_v62  ;;  %3575 = vmatprep.subr.bf16.mxu1 %v4708_v63  ;;  %v4798_v62 = vld [vmem:[#allocation6 + $0x3c4] ss:$16 sps:$4 sm:$0xff]   ;;  %v4801_v63 = vld [vmem:[#allocation6 + $0x3cc] ss:$16 sps:$4 sm:$0xff]  }
  0x99   :  { %3248 = vmatpush1.bf16.msra.mxu0 %v4710_v0  ;;  %3576 = vmatpush1.bf16.msra.mxu1 %v4711_v1  ;;  %v4796_v0 = vld [vmem:[#allocation6 + $0x3c0] ss:$16 sps:$4 sm:$0xff]   ;;  %v4799_v1 = vld [vmem:[#allocation6 + $0x3c8] ss:$16 sps:$4 sm:$0xff]  }
  0x9a   :  { %3258 = vmatprep.subr.bf16.mxu0 %v4714_v3  ;;  %3586 = vmatprep.subr.bf16.mxu1 %v4717_v4  ;;  %v4807_v3 = vld [vmem:[#allocation6 + $0x3ec] ss:$16 sps:$4 sm:$0xff]   ;;  %v4802_v4 = vld [vmem:[#allocation6 + $0x3e0] ss:$16 sps:$4 sm:$0xff]  }
  0x9c   :  { %3250 = vmatmul.mubr.bf16.vlgmr.msra.gmra.mrb[0].mxu0 %v107_v5  ;;  %3578 = vmatmul.mubr.bf16.vlgmr.msra.gmra.mrb[0].mxu1 %v107_v5  ;;  %v4805_v5 = vld [vmem:[#allocation6 + $0x3e8] ss:$16 sps:$4 sm:$0xff]  }
  0x9d   :  { %3259 = vmatpush1.bf16.msra.mxu0 %v4712_v6  ;;  %3587 = vmatpush1.bf16.msra.mxu1 %v4715_v7  ;;  %v4810_v6 = vld [vmem:[#allocation6 + $0x404] ss:$16 sps:$4 sm:$0xff]  }
  0x9e   :  { %3260 = vmatprep.subr.bf16.mxu0 %v4720_v8  ;;  %3588 = vmatprep.subr.bf16.mxu1 %v4723_v9  ;;  %v93_v7 = vld [vmem:[#allocation3 + $0x10] sm:$0xff]  ;;  %v4813_v8 = vld [vmem:[#allocation6 + $0x40c] ss:$16 sps:$4 sm:$0xff]  }
  0x9f   :  { %3290 = vmatprep.mubr.bf16.mxu0 %v110_v32  ;;  %3618 = vmatprep.mubr.bf16.mxu1 %v110_v32  ;;  %v4808_v9 = vld [vmem:[#allocation6 + $0x400] ss:$16 sps:$4 sm:$0xff]  }
  0xa0   :  { %v4838_v32 = vld [vmem:[#allocation6 + $0x4a0] ss:$16 sps:$4 sm:$0xff]  }
  0xa1   :  { %3261 = vmatpush1.bf16.msra.mxu0 %v4718_v10  ;;  %3589 = vmatpush1.bf16.msra.mxu1 %v4721_v11  ;;  %v4811_v10 = vld [vmem:[#allocation6 + $0x408] ss:$16 sps:$4 sm:$0xff]   ;;  %v109_v11 = vpack.c.bf16 %v93_v7, %v93_v7  ;;  %v4903_v7 = vld [vmem:[#allocation6 + $0x5ec] ss:$16 sps:$4 sm:$0xff]  }
  0xa2   :  { %3262 = vmatprep.subr.bf16.mxu0 %v4726_v12  ;;  %3590 = vmatprep.subr.bf16.mxu1 %v4729_v13  ;;  %v4816_v12 = vld [vmem:[#allocation6 + $0x424] ss:$16 sps:$4 sm:$0xff]   ;;  %v4819_v13 = vld [vmem:[#allocation6 + $0x42c] ss:$16 sps:$4 sm:$0xff]  }
  0xa5   :  { %3263 = vmatpush1.bf16.msra.mxu0 %v4724_v14  ;;  %3591 = vmatpush1.bf16.msra.mxu1 %v4727_v15  ;;  %v96_v14 = vld [vmem:[#allocation3 + $0x28] sm:$0xff] }
  0xa6   :  { %3264 = vmatprep.subr.bf16.mxu0 %v4732_v16  ;;  %3592 = vmatprep.subr.bf16.mxu1 %v4735_v17  ;;  %v112_v15 = vpack.c.bf16 %v96_v14, %v96_v14  ;;  %v4814_v16 = vld [vmem:[#allocation6 + $0x420] ss:$16 sps:$4 sm:$0xff]   ;;  %v4817_v17 = vld [vmem:[#allocation6 + $0x428] ss:$16 sps:$4 sm:$0xff]  }
  0xa7   :  { %v4907_v14 = vld [vmem:[#allocation6 + $0x608] ss:$16 sps:$4 sm:$0xff]  }
  0xa9   :  { %3265 = vmatpush1.bf16.msra.mxu0 %v4730_v18  ;;  %3593 = vmatpush1.bf16.msra.mxu1 %v4733_v19  ;;  %v4822_v18 = vld [vmem:[#allocation6 + $0x444] ss:$16 sps:$4 sm:$0xff]   ;;  %v4825_v19 = vld [vmem:[#allocation6 + $0x44c] ss:$16 sps:$4 sm:$0xff]  }
  0xaa   :  { %3266 = vmatprep.subr.bf16.mxu0 %v4738_v20  ;;  %3594 = vmatprep.subr.bf16.mxu1 %v4741_v21  ;;  %v4820_v20 = vld [vmem:[#allocation6 + $0x440] ss:$16 sps:$4 sm:$0xff]   ;;  %v4823_v21 = vld [vmem:[#allocation6 + $0x448] ss:$16 sps:$4 sm:$0xff]  }
  0xad   :  { %3267 = vmatpush1.bf16.msra.mxu0 %v4736_v22  ;;  %3595 = vmatpush1.bf16.msra.mxu1 %v4739_v23  ;;  %v4828_v22 = vld [vmem:[#allocation6 + $0x464] ss:$16 sps:$4 sm:$0xff]   ;;  %v4831_v23 = vld [vmem:[#allocation6 + $0x46c] ss:$16 sps:$4 sm:$0xff]  }
  0xae   :  { %3268 = vmatprep.subr.bf16.mxu0 %v4744_v24  ;;  %3596 = vmatprep.subr.bf16.mxu1 %v4747_v25  ;;  %v4826_v24 = vld [vmem:[#allocation6 + $0x460] ss:$16 sps:$4 sm:$0xff]   ;;  %v4829_v25 = vld [vmem:[#allocation6 + $0x468] ss:$16 sps:$4 sm:$0xff]  }
  0xb1   :  { %3269 = vmatpush1.bf16.msra.mxu0 %v4742_v26  ;;  %3597 = vmatpush1.bf16.msra.mxu1 %v4745_v27  ;;  %v4834_v26 = vld [vmem:[#allocation6 + $0x484] ss:$16 sps:$4 sm:$0xff]   ;;  %v4837_v27 = vld [vmem:[#allocation6 + $0x48c] ss:$16 sps:$4 sm:$0xff]  }
  0xb2   :  { %3270 = vmatprep.subr.bf16.mxu0 %v4750_v28  ;;  %3598 = vmatprep.subr.bf16.mxu1 %v4753_v29  ;;  %v4832_v28 = vld [vmem:[#allocation6 + $0x480] ss:$16 sps:$4 sm:$0xff]   ;;  %v4835_v29 = vld [vmem:[#allocation6 + $0x488] ss:$16 sps:$4 sm:$0xff]  }
  0xb5   :  { %3271 = vmatpush1.bf16.msra.mxu0 %v4748_v31  ;;  %3599 = vmatpush1.bf16.msra.mxu1 %v4751_v33  ;;  %v4843_v31 = vld [vmem:[#allocation6 + $0x4ac] ss:$16 sps:$4 sm:$0xff]   ;;  %v4841_v33 = vld [vmem:[#allocation6 + $0x4a8] ss:$16 sps:$4 sm:$0xff]  }
  0xb6   :  { %3272 = vmatprep.subr.bf16.mxu0 %v4756_v34  ;;  %3600 = vmatprep.subr.bf16.mxu1 %v4759_v35  ;;  %v4846_v34 = vld [vmem:[#allocation6 + $0x4c4] ss:$16 sps:$4 sm:$0xff]   ;;  %v4849_v35 = vld [vmem:[#allocation6 + $0x4cc] ss:$16 sps:$4 sm:$0xff]  }
  0xb9   :  { %3273 = vmatpush1.bf16.msra.mxu0 %v4754_v36  ;;  %3601 = vmatpush1.bf16.msra.mxu1 %v4757_v37  ;;  %v4844_v36 = vld [vmem:[#allocation6 + $0x4c0] ss:$16 sps:$4 sm:$0xff]   ;;  %v4847_v37 = vld [vmem:[#allocation6 + $0x4c8] ss:$16 sps:$4 sm:$0xff]  }
  0xba   :  { %3274 = vmatprep.subr.bf16.mxu0 %v4762_v38  ;;  %3602 = vmatprep.subr.bf16.mxu1 %v4765_v39  ;;  %v4852_v38 = vld [vmem:[#allocation6 + $0x4e4] ss:$16 sps:$4 sm:$0xff]   ;;  %v4855_v39 = vld [vmem:[#allocation6 + $0x4ec] ss:$16 sps:$4 sm:$0xff]  }
  0xbd   :  { %3275 = vmatpush1.bf16.msra.mxu0 %v4760_v40  ;;  %3603 = vmatpush1.bf16.msra.mxu1 %v4763_v41  ;;  %v4850_v40 = vld [vmem:[#allocation6 + $0x4e0] ss:$16 sps:$4 sm:$0xff]   ;;  %v4853_v41 = vld [vmem:[#allocation6 + $0x4e8] ss:$16 sps:$4 sm:$0xff]  }
  0xbe   :  { %3276 = vmatprep.subr.bf16.mxu0 %v4768_v42  ;;  %3604 = vmatprep.subr.bf16.mxu1 %v4771_v43  ;;  %v4858_v42 = vld [vmem:[#allocation6 + $0x504] ss:$16 sps:$4 sm:$0xff]   ;;  %v4861_v43 = vld [vmem:[#allocation6 + $0x50c] ss:$16 sps:$4 sm:$0xff]  }
  0xc1   :  { %3277 = vmatpush1.bf16.msra.mxu0 %v4766_v44  ;;  %3605 = vmatpush1.bf16.msra.mxu1 %v4769_v45  ;;  %v4856_v44 = vld [vmem:[#allocation6 + $0x500] ss:$16 sps:$4 sm:$0xff]   ;;  %v4859_v45 = vld [vmem:[#allocation6 + $0x508] ss:$16 sps:$4 sm:$0xff]  }
  0xc2   :  { %3278 = vmatprep.subr.bf16.mxu0 %v4774_v46  ;;  %3606 = vmatprep.subr.bf16.mxu1 %v4777_v47  ;;  %v4864_v46 = vld [vmem:[#allocation6 + $0x524] ss:$16 sps:$4 sm:$0xff]   ;;  %v4867_v47 = vld [vmem:[#allocation6 + $0x52c] ss:$16 sps:$4 sm:$0xff]  }
  0xc5   :  { %3279 = vmatpush1.bf16.msra.mxu0 %v4772_v48  ;;  %3607 = vmatpush1.bf16.msra.mxu1 %v4775_v49  ;;  %v4862_v48 = vld [vmem:[#allocation6 + $0x520] ss:$16 sps:$4 sm:$0xff]   ;;  %v4865_v49 = vld [vmem:[#allocation6 + $0x528] ss:$16 sps:$4 sm:$0xff]  }
  0xc6   :  { %3280 = vmatprep.subr.bf16.mxu0 %v4780_v50  ;;  %3608 = vmatprep.subr.bf16.mxu1 %v4783_v51  ;;  %v4870_v50 = vld [vmem:[#allocation6 + $0x544] ss:$16 sps:$4 sm:$0xff]   ;;  %v4873_v51 = vld [vmem:[#allocation6 + $0x54c] ss:$16 sps:$4 sm:$0xff]  }
  0xc9   :  { %3281 = vmatpush1.bf16.msra.mxu0 %v4778_v52  ;;  %3609 = vmatpush1.bf16.msra.mxu1 %v4781_v53  ;;  %v4868_v52 = vld [vmem:[#allocation6 + $0x540] ss:$16 sps:$4 sm:$0xff]   ;;  %v4871_v53 = vld [vmem:[#allocation6 + $0x548] ss:$16 sps:$4 sm:$0xff]  }
  0xca   :  { %3282 = vmatprep.subr.bf16.mxu0 %v4786_v54  ;;  %3610 = vmatprep.subr.bf16.mxu1 %v4789_v55  ;;  %v4876_v54 = vld [vmem:[#allocation6 + $0x564] ss:$16 sps:$4 sm:$0xff]   ;;  %v4879_v55 = vld [vmem:[#allocation6 + $0x56c] ss:$16 sps:$4 sm:$0xff]  }
  0xcd   :  { %3283 = vmatpush1.bf16.msra.mxu0 %v4784_v56  ;;  %3611 = vmatpush1.bf16.msra.mxu1 %v4787_v57  ;;  %v4874_v56 = vld [vmem:[#allocation6 + $0x560] ss:$16 sps:$4 sm:$0xff]   ;;  %v4877_v57 = vld [vmem:[#allocation6 + $0x568] ss:$16 sps:$4 sm:$0xff]  }
  0xce   :  { %3284 = vmatprep.subr.bf16.mxu0 %v4792_v58  ;;  %3612 = vmatprep.subr.bf16.mxu1 %v4795_v59  ;;  %v4882_v58 = vld [vmem:[#allocation6 + $0x584] ss:$16 sps:$4 sm:$0xff]   ;;  %v4885_v59 = vld [vmem:[#allocation6 + $0x58c] ss:$16 sps:$4 sm:$0xff]  }
  0xd1   :  { %3285 = vmatpush1.bf16.msra.mxu0 %v4790_v60  ;;  %3613 = vmatpush1.bf16.msra.mxu1 %v4793_v61  ;;  %v4880_v60 = vld [vmem:[#allocation6 + $0x580] ss:$16 sps:$4 sm:$0xff]   ;;  %v4883_v61 = vld [vmem:[#allocation6 + $0x588] ss:$16 sps:$4 sm:$0xff]  }
  0xd2   :  { %3286 = vmatprep.subr.bf16.mxu0 %v4798_v62  ;;  %3614 = vmatprep.subr.bf16.mxu1 %v4801_v63  ;;  %v4888_v62 = vld [vmem:[#allocation6 + $0x5a4] ss:$16 sps:$4 sm:$0xff]   ;;  %v4891_v63 = vld [vmem:[#allocation6 + $0x5ac] ss:$16 sps:$4 sm:$0xff]  }
  0xd5   :  { %3287 = vmatpush1.bf16.msra.mxu0 %v4796_v0  ;;  %3615 = vmatpush1.bf16.msra.mxu1 %v4799_v1  ;;  %v4886_v0 = vld [vmem:[#allocation6 + $0x5a0] ss:$16 sps:$4 sm:$0xff]   ;;  %v4889_v1 = vld [vmem:[#allocation6 + $0x5a8] ss:$16 sps:$4 sm:$0xff]  }
  0xd6   :  { %3288 = vmatprep.subr.bf16.mxu0 %v4804_v2  ;;  %3616 = vmatprep.subr.bf16.mxu1 %v4807_v3  ;;  %v4894_v2 = vld [vmem:[#allocation6 + $0x5c4] ss:$16 sps:$4 sm:$0xff]   ;;  %v4897_v3 = vld [vmem:[#allocation6 + $0x5cc] ss:$16 sps:$4 sm:$0xff]  }
  0xd9   :  { %3289 = vmatpush1.bf16.msra.mxu0 %v4802_v4  ;;  %3617 = vmatpush1.bf16.msra.mxu1 %v4805_v5  ;;  %v4892_v4 = vld [vmem:[#allocation6 + $0x5c0] ss:$16 sps:$4 sm:$0xff]   ;;  %v4895_v5 = vld [vmem:[#allocation6 + $0x5c8] ss:$16 sps:$4 sm:$0xff]  }
  0xda   :  { %3299 = vmatprep.subr.bf16.mxu0 %v4810_v6  ;;  %3627 = vmatprep.subr.bf16.mxu1 %v4813_v8  ;;  %v4900_v6 = vld [vmem:[#allocation6 + $0x5e4] ss:$16 sps:$4 sm:$0xff]   ;;  %v4898_v8 = vld [vmem:[#allocation6 + $0x5e0] ss:$16 sps:$4 sm:$0xff]  }
  0xdc   :  { %3291 = vmatmul.mubr.bf16.vlgmr.msra.gmra.mrb[0].mxu0 %v109_v11  ;;  %3619 = vmatmul.mubr.bf16.vlgmr.msra.gmra.mrb[0].mxu1 %v109_v11  ;;  %v95_v11 = vld [vmem:[#allocation3 + $0x20] sm:$0xff] }
  0xdd   :  { %3300 = vmatpush1.bf16.msra.mxu0 %v4808_v9  ;;  %3628 = vmatpush1.bf16.msra.mxu1 %v4811_v10  ;;  %v4901_v9 = vld [vmem:[#allocation6 + $0x5e8] ss:$16 sps:$4 sm:$0xff]   ;;  %v4906_v10 = vld [vmem:[#allocation6 + $0x604] ss:$16 sps:$4 sm:$0xff]  }
  0xde   :  { %3301 = vmatprep.subr.bf16.mxu0 %v4816_v12  ;;  %3629 = vmatprep.subr.bf16.mxu1 %v4819_v13  ;;  %v4909_v12 = vld [vmem:[#allocation6 + $0x60c] ss:$16 sps:$4 sm:$0xff]   ;;  %v4904_v13 = vld [vmem:[#allocation6 + $0x600] ss:$16 sps:$4 sm:$0xff]  }
  0xdf   :  { %3331 = vmatprep.mubr.bf16.mxu0 %v112_v15  ;;  %3659 = vmatprep.mubr.bf16.mxu1 %v112_v15  ;;  %v111_v15 = vpack.c.bf16 %v95_v11, %v95_v11  ;;  %v4999_v11 = vld [vmem:[#allocation6 + $0x7ec] ss:$16 sps:$4 sm:$0xff]  }
  0xe1   :  { %3302 = vmatpush1.bf16.msra.mxu0 %v4814_v16  ;;  %3630 = vmatpush1.bf16.msra.mxu1 %v4817_v17  ;;  %v98_v16 = vld [vmem:[#allocation3 + $0x38] sm:$0xff]  ;;  %v4912_v17 = vld [vmem:[#allocation6 + $0x624] ss:$16 sps:$4 sm:$0xff]  }
  0xe2   :  { %3303 = vmatprep.subr.bf16.mxu0 %v4822_v18  ;;  %3631 = vmatprep.subr.bf16.mxu1 %v4825_v19  ;;  %v4915_v18 = vld [vmem:[#allocation6 + $0x62c] ss:$16 sps:$4 sm:$0xff]   ;;  %v114_v19 = vpack.c.bf16 %v98_v16, %v98_v16 }
  0xe3   :  { %v5005_v16 = vld [vmem:[#allocation6 + $0x80c] ss:$16 sps:$4 sm:$0xff]  }
  0xe5   :  { %3304 = vmatpush1.bf16.msra.mxu0 %v4820_v20  ;;  %3632 = vmatpush1.bf16.msra.mxu1 %v4823_v21  ;;  %v4910_v20 = vld [vmem:[#allocation6 + $0x620] ss:$16 sps:$4 sm:$0xff]   ;;  %v4913_v21 = vld [vmem:[#allocation6 + $0x628] ss:$16 sps:$4 sm:$0xff]  }
  0xe6   :  { %3305 = vmatprep.subr.bf16.mxu0 %v4828_v22  ;;  %3633 = vmatprep.subr.bf16.mxu1 %v4831_v23  ;;  %v4918_v22 = vld [vmem:[#allocation6 + $0x644] ss:$16 sps:$4 sm:$0xff]   ;;  %v4921_v23 = vld [vmem:[#allocation6 + $0x64c] ss:$16 sps:$4 sm:$0xff]  }
  0xe9   :  { %3306 = vmatpush1.bf16.msra.mxu0 %v4826_v24  ;;  %3634 = vmatpush1.bf16.msra.mxu1 %v4829_v25  ;;  %v4916_v24 = vld [vmem:[#allocation6 + $0x640] ss:$16 sps:$4 sm:$0xff]   ;;  %v4919_v25 = vld [vmem:[#allocation6 + $0x648] ss:$16 sps:$4 sm:$0xff]  }
  0xea   :  { %3307 = vmatprep.subr.bf16.mxu0 %v4834_v26  ;;  %3635 = vmatprep.subr.bf16.mxu1 %v4837_v27  ;;  %v4924_v26 = vld [vmem:[#allocation6 + $0x664] ss:$16 sps:$4 sm:$0xff]   ;;  %v4927_v27 = vld [vmem:[#allocation6 + $0x66c] ss:$16 sps:$4 sm:$0xff]  }
  0xed   :  { %3308 = vmatpush1.bf16.msra.mxu0 %v4832_v28  ;;  %3636 = vmatpush1.bf16.msra.mxu1 %v4835_v29  ;;  %v4922_v28 = vld [vmem:[#allocation6 + $0x660] ss:$16 sps:$4 sm:$0xff]   ;;  %v4925_v29 = vld [vmem:[#allocation6 + $0x668] ss:$16 sps:$4 sm:$0xff]  }
  0xee   :  { %3309 = vmatprep.subr.bf16.mxu0 %v4840_v30  ;;  %3637 = vmatprep.subr.bf16.mxu1 %v4843_v31  ;;  %v4930_v30 = vld [vmem:[#allocation6 + $0x684] ss:$16 sps:$4 sm:$0xff]   ;;  %v4933_v31 = vld [vmem:[#allocation6 + $0x68c] ss:$16 sps:$4 sm:$0xff]  }
  0xf1   :  { %3310 = vmatpush1.bf16.msra.mxu0 %v4838_v32  ;;  %3638 = vmatpush1.bf16.msra.mxu1 %v4841_v33  ;;  %v4928_v32 = vld [vmem:[#allocation6 + $0x680] ss:$16 sps:$4 sm:$0xff]   ;;  %v4931_v33 = vld [vmem:[#allocation6 + $0x688] ss:$16 sps:$4 sm:$0xff]  }
  0xf2   :  { %3311 = vmatprep.subr.bf16.mxu0 %v4846_v34  ;;  %3639 = vmatprep.subr.bf16.mxu1 %v4849_v35  ;;  %v4936_v34 = vld [vmem:[#allocation6 + $0x6a4] ss:$16 sps:$4 sm:$0xff]   ;;  %v4939_v35 = vld [vmem:[#allocation6 + $0x6ac] ss:$16 sps:$4 sm:$0xff]  }
  0xf5   :  { %3312 = vmatpush1.bf16.msra.mxu0 %v4844_v36  ;;  %3640 = vmatpush1.bf16.msra.mxu1 %v4847_v37  ;;  %v4934_v36 = vld [vmem:[#allocation6 + $0x6a0] ss:$16 sps:$4 sm:$0xff]   ;;  %v4937_v37 = vld [vmem:[#allocation6 + $0x6a8] ss:$16 sps:$4 sm:$0xff]  }
  0xf6   :  { %3313 = vmatprep.subr.bf16.mxu0 %v4852_v38  ;;  %3641 = vmatprep.subr.bf16.mxu1 %v4855_v39  ;;  %v4942_v38 = vld [vmem:[#allocation6 + $0x6c4] ss:$16 sps:$4 sm:$0xff]   ;;  %v4945_v39 = vld [vmem:[#allocation6 + $0x6cc] ss:$16 sps:$4 sm:$0xff]  }
  0xf9   :  { %3314 = vmatpush1.bf16.msra.mxu0 %v4850_v40  ;;  %3642 = vmatpush1.bf16.msra.mxu1 %v4853_v41  ;;  %v4940_v40 = vld [vmem:[#allocation6 + $0x6c0] ss:$16 sps:$4 sm:$0xff]   ;;  %v4943_v41 = vld [vmem:[#allocation6 + $0x6c8] ss:$16 sps:$4 sm:$0xff]  }
  0xfa   :  { %3315 = vmatprep.subr.bf16.mxu0 %v4858_v42  ;;  %3643 = vmatprep.subr.bf16.mxu1 %v4861_v43  ;;  %v4948_v42 = vld [vmem:[#allocation6 + $0x6e4] ss:$16 sps:$4 sm:$0xff]   ;;  %v4951_v43 = vld [vmem:[#allocation6 + $0x6ec] ss:$16 sps:$4 sm:$0xff]  }
  0xfd   :  { %3316 = vmatpush1.bf16.msra.mxu0 %v4856_v44  ;;  %3644 = vmatpush1.bf16.msra.mxu1 %v4859_v45  ;;  %v4946_v44 = vld [vmem:[#allocation6 + $0x6e0] ss:$16 sps:$4 sm:$0xff]   ;;  %v4949_v45 = vld [vmem:[#allocation6 + $0x6e8] ss:$16 sps:$4 sm:$0xff]  }
  0xfe   :  { %3317 = vmatprep.subr.bf16.mxu0 %v4864_v46  ;;  %3645 = vmatprep.subr.bf16.mxu1 %v4867_v47  ;;  %v4954_v46 = vld [vmem:[#allocation6 + $0x704] ss:$16 sps:$4 sm:$0xff]   ;;  %v4957_v47 = vld [vmem:[#allocation6 + $0x70c] ss:$16 sps:$4 sm:$0xff]  }
 0x101   :  { %3318 = vmatpush1.bf16.msra.mxu0 %v4862_v48  ;;  %3646 = vmatpush1.bf16.msra.mxu1 %v4865_v49  ;;  %v4952_v48 = vld [vmem:[#allocation6 + $0x700] ss:$16 sps:$4 sm:$0xff]   ;;  %v4955_v49 = vld [vmem:[#allocation6 + $0x708] ss:$16 sps:$4 sm:$0xff]  }
 0x102   :  { %3319 = vmatprep.subr.bf16.mxu0 %v4870_v50  ;;  %3647 = vmatprep.subr.bf16.mxu1 %v4873_v51  ;;  %v4960_v50 = vld [vmem:[#allocation6 + $0x724] ss:$16 sps:$4 sm:$0xff]   ;;  %v4963_v51 = vld [vmem:[#allocation6 + $0x72c] ss:$16 sps:$4 sm:$0xff]  }
 0x105   :  { %3320 = vmatpush1.bf16.msra.mxu0 %v4868_v52  ;;  %3648 = vmatpush1.bf16.msra.mxu1 %v4871_v53  ;;  %v4958_v52 = vld [vmem:[#allocation6 + $0x720] ss:$16 sps:$4 sm:$0xff]   ;;  %v4961_v53 = vld [vmem:[#allocation6 + $0x728] ss:$16 sps:$4 sm:$0xff]  }
 0x106   :  { %3321 = vmatprep.subr.bf16.mxu0 %v4876_v54  ;;  %3649 = vmatprep.subr.bf16.mxu1 %v4879_v55  ;;  %v4966_v54 = vld [vmem:[#allocation6 + $0x744] ss:$16 sps:$4 sm:$0xff]   ;;  %v4969_v55 = vld [vmem:[#allocation6 + $0x74c] ss:$16 sps:$4 sm:$0xff]  }
 0x109   :  { %3322 = vmatpush1.bf16.msra.mxu0 %v4874_v56  ;;  %3650 = vmatpush1.bf16.msra.mxu1 %v4877_v57  ;;  %v4964_v56 = vld [vmem:[#allocation6 + $0x740] ss:$16 sps:$4 sm:$0xff]   ;;  %v4967_v57 = vld [vmem:[#allocation6 + $0x748] ss:$16 sps:$4 sm:$0xff]  }
 0x10a   :  { %3323 = vmatprep.subr.bf16.mxu0 %v4882_v58  ;;  %3651 = vmatprep.subr.bf16.mxu1 %v4885_v59  ;;  %v4972_v58 = vld [vmem:[#allocation6 + $0x764] ss:$16 sps:$4 sm:$0xff]   ;;  %v4975_v59 = vld [vmem:[#allocation6 + $0x76c] ss:$16 sps:$4 sm:$0xff]  }
 0x10d   :  { %3324 = vmatpush1.bf16.msra.mxu0 %v4880_v60  ;;  %3652 = vmatpush1.bf16.msra.mxu1 %v4883_v61  ;;  %v4970_v60 = vld [vmem:[#allocation6 + $0x760] ss:$16 sps:$4 sm:$0xff]   ;;  %v4973_v61 = vld [vmem:[#allocation6 + $0x768] ss:$16 sps:$4 sm:$0xff]  }
 0x10e   :  { %3325 = vmatprep.subr.bf16.mxu0 %v4888_v62  ;;  %3653 = vmatprep.subr.bf16.mxu1 %v4891_v63  ;;  %v4978_v62 = vld [vmem:[#allocation6 + $0x784] ss:$16 sps:$4 sm:$0xff]   ;;  %v4981_v63 = vld [vmem:[#allocation6 + $0x78c] ss:$16 sps:$4 sm:$0xff]  }
 0x111   :  { %3326 = vmatpush1.bf16.msra.mxu0 %v4886_v0  ;;  %3654 = vmatpush1.bf16.msra.mxu1 %v4889_v1  ;;  %v4976_v0 = vld [vmem:[#allocation6 + $0x780] ss:$16 sps:$4 sm:$0xff]   ;;  %v4979_v1 = vld [vmem:[#allocation6 + $0x788] ss:$16 sps:$4 sm:$0xff]  }
 0x112   :  { %3327 = vmatprep.subr.bf16.mxu0 %v4894_v2  ;;  %3655 = vmatprep.subr.bf16.mxu1 %v4897_v3  ;;  %v4984_v2 = vld [vmem:[#allocation6 + $0x7a4] ss:$16 sps:$4 sm:$0xff]   ;;  %v4987_v3 = vld [vmem:[#allocation6 + $0x7ac] ss:$16 sps:$4 sm:$0xff]  }
 0x115   :  { %3328 = vmatpush1.bf16.msra.mxu0 %v4892_v4  ;;  %3656 = vmatpush1.bf16.msra.mxu1 %v4895_v5  ;;  %v4982_v4 = vld [vmem:[#allocation6 + $0x7a0] ss:$16 sps:$4 sm:$0xff]   ;;  %v4985_v5 = vld [vmem:[#allocation6 + $0x7a8] ss:$16 sps:$4 sm:$0xff]  }
 0x116   :  { %3329 = vmatprep.subr.bf16.mxu0 %v4900_v6  ;;  %3657 = vmatprep.subr.bf16.mxu1 %v4903_v7  ;;  %v4990_v6 = vld [vmem:[#allocation6 + $0x7c4] ss:$16 sps:$4 sm:$0xff]   ;;  %v4993_v7 = vld [vmem:[#allocation6 + $0x7cc] ss:$16 sps:$4 sm:$0xff]  }
 0x119   :  { %3330 = vmatpush1.bf16.msra.mxu0 %v4898_v8  ;;  %3658 = vmatpush1.bf16.msra.mxu1 %v4901_v9  ;;  %v4988_v8 = vld [vmem:[#allocation6 + $0x7c0] ss:$16 sps:$4 sm:$0xff]   ;;  %v4991_v9 = vld [vmem:[#allocation6 + $0x7c8] ss:$16 sps:$4 sm:$0xff]  }
 0x11a   :  { %3340 = vmatprep.subr.bf16.mxu0 %v4906_v10  ;;  %3668 = vmatprep.subr.bf16.mxu1 %v4909_v12  ;;  %v4996_v10 = vld [vmem:[#allocation6 + $0x7e4] ss:$16 sps:$4 sm:$0xff]   ;;  %v4994_v12 = vld [vmem:[#allocation6 + $0x7e0] ss:$16 sps:$4 sm:$0xff]  }
 0x11c   :  { %3332 = vmatmul.mubr.bf16.vlgmr.msra.gmra.mrb[0].mxu0 %v111_v15  ;;  %3660 = vmatmul.mubr.bf16.vlgmr.msra.gmra.mrb[0].mxu1 %v111_v15  ;;  %v5002_v15 = vld [vmem:[#allocation6 + $0x804] ss:$16 sps:$4 sm:$0xff]  }
 0x11d   :  { %3341 = vmatpush1.bf16.msra.mxu0 %v4904_v13  ;;  %3669 = vmatpush1.bf16.msra.mxu1 %v4907_v14  ;;  %v4997_v13 = vld [vmem:[#allocation6 + $0x7e8] ss:$16 sps:$4 sm:$0xff]   ;;  %v97_v14 = vld [vmem:[#allocation3 + $0x30] sm:$0xff] }
 0x11e   :  { %3342 = vmatprep.subr.bf16.mxu0 %v4912_v17  ;;  %3670 = vmatprep.subr.bf16.mxu1 %v4915_v18  ;;  %v113_v17 = vpack.c.bf16 %v97_v14, %v97_v14  ;;  %v100_v18 = vld [vmem:[#allocation3 + $0x48] sm:$0xff]  ;;  %v5092_v14 = vld [vmem:[#allocation6 + $0x9e4] ss:$16 sps:$4 sm:$0xff]  }
 0x11f   :  { %3372 = vmatprep.mubr.bf16.mxu0 %v114_v19  ;;  %3700 = vmatprep.mubr.bf16.mxu1 %v114_v19  ;;  %v5000_v19 = vld [vmem:[#allocation6 + $0x800] ss:$16 sps:$4 sm:$0xff]  }
 0x121   :  { %3343 = vmatpush1.bf16.msra.mxu0 %v4910_v20  ;;  %3671 = vmatpush1.bf16.msra.mxu1 %v4913_v21  ;;  %v5003_v20 = vld [vmem:[#allocation6 + $0x808] ss:$16 sps:$4 sm:$0xff]   ;;  %v5008_v21 = vld [vmem:[#allocation6 + $0x824] ss:$16 sps:$4 sm:$0xff]  }
 0x122   :  { %3344 = vmatprep.subr.bf16.mxu0 %v4918_v22  ;;  %3672 = vmatprep.subr.bf16.mxu1 %v4921_v23  ;;  %v5011_v22 = vld [vmem:[#allocation6 + $0x82c] ss:$16 sps:$4 sm:$0xff]   ;;  %v116_v23 = vpack.c.bf16 %v100_v18, %v100_v18  ;;  %v5098_v18 = vld [vmem:[#allocation6 + $0xa04] ss:$16 sps:$4 sm:$0xff]  }
 0x125   :  { %3345 = vmatpush1.bf16.msra.mxu0 %v4916_v24  ;;  %3673 = vmatpush1.bf16.msra.mxu1 %v4919_v25  ;;  %v5006_v24 = vld [vmem:[#allocation6 + $0x820] ss:$16 sps:$4 sm:$0xff]   ;;  %v5009_v25 = vld [vmem:[#allocation6 + $0x828] ss:$16 sps:$4 sm:$0xff]  }
 0x126   :  { %3346 = vmatprep.subr.bf16.mxu0 %v4924_v26  ;;  %3674 = vmatprep.subr.bf16.mxu1 %v4927_v27  ;;  %v5014_v26 = vld [vmem:[#allocation6 + $0x844] ss:$16 sps:$4 sm:$0xff]   ;;  %v5017_v27 = vld [vmem:[#allocation6 + $0x84c] ss:$16 sps:$4 sm:$0xff]  }
 0x129   :  { %3347 = vmatpush1.bf16.msra.mxu0 %v4922_v28  ;;  %3675 = vmatpush1.bf16.msra.mxu1 %v4925_v29  ;;  %v5012_v28 = vld [vmem:[#allocation6 + $0x840] ss:$16 sps:$4 sm:$0xff]   ;;  %v5015_v29 = vld [vmem:[#allocation6 + $0x848] ss:$16 sps:$4 sm:$0xff]  }
 0x12a   :  { %3348 = vmatprep.subr.bf16.mxu0 %v4930_v30  ;;  %3676 = vmatprep.subr.bf16.mxu1 %v4933_v31  ;;  %v5020_v30 = vld [vmem:[#allocation6 + $0x864] ss:$16 sps:$4 sm:$0xff]   ;;  %v5023_v31 = vld [vmem:[#allocation6 + $0x86c] ss:$16 sps:$4 sm:$0xff]  }
 0x12d   :  { %3349 = vmatpush1.bf16.msra.mxu0 %v4928_v32  ;;  %3677 = vmatpush1.bf16.msra.mxu1 %v4931_v33  ;;  %v5018_v32 = vld [vmem:[#allocation6 + $0x860] ss:$16 sps:$4 sm:$0xff]   ;;  %v5021_v33 = vld [vmem:[#allocation6 + $0x868] ss:$16 sps:$4 sm:$0xff]  }
 0x12e   :  { %3350 = vmatprep.subr.bf16.mxu0 %v4936_v34  ;;  %3678 = vmatprep.subr.bf16.mxu1 %v4939_v35  ;;  %v5026_v34 = vld [vmem:[#allocation6 + $0x884] ss:$16 sps:$4 sm:$0xff]   ;;  %v5029_v35 = vld [vmem:[#allocation6 + $0x88c] ss:$16 sps:$4 sm:$0xff]  }
 0x131   :  { %3351 = vmatpush1.bf16.msra.mxu0 %v4934_v36  ;;  %3679 = vmatpush1.bf16.msra.mxu1 %v4937_v37  ;;  %v5024_v36 = vld [vmem:[#allocation6 + $0x880] ss:$16 sps:$4 sm:$0xff]   ;;  %v5027_v37 = vld [vmem:[#allocation6 + $0x888] ss:$16 sps:$4 sm:$0xff]  }
 0x132   :  { %3352 = vmatprep.subr.bf16.mxu0 %v4942_v38  ;;  %3680 = vmatprep.subr.bf16.mxu1 %v4945_v39  ;;  %v5032_v38 = vld [vmem:[#allocation6 + $0x8a4] ss:$16 sps:$4 sm:$0xff]   ;;  %v5035_v39 = vld [vmem:[#allocation6 + $0x8ac] ss:$16 sps:$4 sm:$0xff]  }
 0x135   :  { %3353 = vmatpush1.bf16.msra.mxu0 %v4940_v40  ;;  %3681 = vmatpush1.bf16.msra.mxu1 %v4943_v41  ;;  %v5030_v40 = vld [vmem:[#allocation6 + $0x8a0] ss:$16 sps:$4 sm:$0xff]   ;;  %v5033_v41 = vld [vmem:[#allocation6 + $0x8a8] ss:$16 sps:$4 sm:$0xff]  }
 0x136   :  { %3354 = vmatprep.subr.bf16.mxu0 %v4948_v42  ;;  %3682 = vmatprep.subr.bf16.mxu1 %v4951_v43  ;;  %v5038_v42 = vld [vmem:[#allocation6 + $0x8c4] ss:$16 sps:$4 sm:$0xff]   ;;  %v5041_v43 = vld [vmem:[#allocation6 + $0x8cc] ss:$16 sps:$4 sm:$0xff]  }
 0x139   :  { %3355 = vmatpush1.bf16.msra.mxu0 %v4946_v44  ;;  %3683 = vmatpush1.bf16.msra.mxu1 %v4949_v45  ;;  %v5036_v44 = vld [vmem:[#allocation6 + $0x8c0] ss:$16 sps:$4 sm:$0xff]   ;;  %v5039_v45 = vld [vmem:[#allocation6 + $0x8c8] ss:$16 sps:$4 sm:$0xff]  }
 0x13a   :  { %3356 = vmatprep.subr.bf16.mxu0 %v4954_v46  ;;  %3684 = vmatprep.subr.bf16.mxu1 %v4957_v47  ;;  %v5044_v46 = vld [vmem:[#allocation6 + $0x8e4] ss:$16 sps:$4 sm:$0xff]   ;;  %v5047_v47 = vld [vmem:[#allocation6 + $0x8ec] ss:$16 sps:$4 sm:$0xff]  }
 0x13d   :  { %3357 = vmatpush1.bf16.msra.mxu0 %v4952_v48  ;;  %3685 = vmatpush1.bf16.msra.mxu1 %v4955_v49  ;;  %v5042_v48 = vld [vmem:[#allocation6 + $0x8e0] ss:$16 sps:$4 sm:$0xff]   ;;  %v5045_v49 = vld [vmem:[#allocation6 + $0x8e8] ss:$16 sps:$4 sm:$0xff]  }
 0x13e   :  { %3358 = vmatprep.subr.bf16.mxu0 %v4960_v50  ;;  %3686 = vmatprep.subr.bf16.mxu1 %v4963_v51  ;;  %v5050_v50 = vld [vmem:[#allocation6 + $0x904] ss:$16 sps:$4 sm:$0xff]   ;;  %v5053_v51 = vld [vmem:[#allocation6 + $0x90c] ss:$16 sps:$4 sm:$0xff]  }
 0x141   :  { %3359 = vmatpush1.bf16.msra.mxu0 %v4958_v52  ;;  %3687 = vmatpush1.bf16.msra.mxu1 %v4961_v53  ;;  %v5048_v52 = vld [vmem:[#allocation6 + $0x900] ss:$16 sps:$4 sm:$0xff]   ;;  %v5051_v53 = vld [vmem:[#allocation6 + $0x908] ss:$16 sps:$4 sm:$0xff]  }
 0x142   :  { %3360 = vmatprep.subr.bf16.mxu0 %v4966_v54  ;;  %3688 = vmatprep.subr.bf16.mxu1 %v4969_v55  ;;  %v5056_v54 = vld [vmem:[#allocation6 + $0x924] ss:$16 sps:$4 sm:$0xff]   ;;  %v5059_v55 = vld [vmem:[#allocation6 + $0x92c] ss:$16 sps:$4 sm:$0xff]  }
 0x145   :  { %3361 = vmatpush1.bf16.msra.mxu0 %v4964_v56  ;;  %3689 = vmatpush1.bf16.msra.mxu1 %v4967_v57  ;;  %v5054_v56 = vld [vmem:[#allocation6 + $0x920] ss:$16 sps:$4 sm:$0xff]   ;;  %v5057_v57 = vld [vmem:[#allocation6 + $0x928] ss:$16 sps:$4 sm:$0xff]  }
 0x146   :  { %3362 = vmatprep.subr.bf16.mxu0 %v4972_v58  ;;  %3690 = vmatprep.subr.bf16.mxu1 %v4975_v59  ;;  %v5062_v58 = vld [vmem:[#allocation6 + $0x944] ss:$16 sps:$4 sm:$0xff]   ;;  %v5065_v59 = vld [vmem:[#allocation6 + $0x94c] ss:$16 sps:$4 sm:$0xff]  }
 0x149   :  { %3363 = vmatpush1.bf16.msra.mxu0 %v4970_v60  ;;  %3691 = vmatpush1.bf16.msra.mxu1 %v4973_v61  ;;  %v5060_v60 = vld [vmem:[#allocation6 + $0x940] ss:$16 sps:$4 sm:$0xff]   ;;  %v5063_v61 = vld [vmem:[#allocation6 + $0x948] ss:$16 sps:$4 sm:$0xff]  }
 0x14a   :  { %3364 = vmatprep.subr.bf16.mxu0 %v4978_v62  ;;  %3692 = vmatprep.subr.bf16.mxu1 %v4981_v63  ;;  %v5068_v62 = vld [vmem:[#allocation6 + $0x964] ss:$16 sps:$4 sm:$0xff]   ;;  %v5071_v63 = vld [vmem:[#allocation6 + $0x96c] ss:$16 sps:$4 sm:$0xff]  }
 0x14d   :  { %3365 = vmatpush1.bf16.msra.mxu0 %v4976_v0  ;;  %3693 = vmatpush1.bf16.msra.mxu1 %v4979_v1  ;;  %v5066_v0 = vld [vmem:[#allocation6 + $0x960] ss:$16 sps:$4 sm:$0xff]   ;;  %v5069_v1 = vld [vmem:[#allocation6 + $0x968] ss:$16 sps:$4 sm:$0xff]  }
 0x14e   :  { %3366 = vmatprep.subr.bf16.mxu0 %v4984_v2  ;;  %3694 = vmatprep.subr.bf16.mxu1 %v4987_v3  ;;  %v5074_v2 = vld [vmem:[#allocation6 + $0x984] ss:$16 sps:$4 sm:$0xff]   ;;  %v5077_v3 = vld [vmem:[#allocation6 + $0x98c] ss:$16 sps:$4 sm:$0xff]  }
 0x151   :  { %3367 = vmatpush1.bf16.msra.mxu0 %v4982_v4  ;;  %3695 = vmatpush1.bf16.msra.mxu1 %v4985_v5  ;;  %v5072_v4 = vld [vmem:[#allocation6 + $0x980] ss:$16 sps:$4 sm:$0xff]   ;;  %v5075_v5 = vld [vmem:[#allocation6 + $0x988] ss:$16 sps:$4 sm:$0xff]  }
 0x152   :  { %3368 = vmatprep.subr.bf16.mxu0 %v4990_v6  ;;  %3696 = vmatprep.subr.bf16.mxu1 %v4993_v7  ;;  %v5080_v6 = vld [vmem:[#allocation6 + $0x9a4] ss:$16 sps:$4 sm:$0xff]   ;;  %v5083_v7 = vld [vmem:[#allocation6 + $0x9ac] ss:$16 sps:$4 sm:$0xff]  }
 0x155   :  { %3369 = vmatpush1.bf16.msra.mxu0 %v4988_v8  ;;  %3697 = vmatpush1.bf16.msra.mxu1 %v4991_v9  ;;  %v5078_v8 = vld [vmem:[#allocation6 + $0x9a0] ss:$16 sps:$4 sm:$0xff]   ;;  %v5081_v9 = vld [vmem:[#allocation6 + $0x9a8] ss:$16 sps:$4 sm:$0xff]  }
 0x156   :  { %3370 = vmatprep.subr.bf16.mxu0 %v4996_v10  ;;  %3698 = vmatprep.subr.bf16.mxu1 %v4999_v11  ;;  %v5086_v10 = vld [vmem:[#allocation6 + $0x9c4] ss:$16 sps:$4 sm:$0xff]   ;;  %v5089_v11 = vld [vmem:[#allocation6 + $0x9cc] ss:$16 sps:$4 sm:$0xff]  }
 0x159   :  { %3371 = vmatpush1.bf16.msra.mxu0 %v4994_v12  ;;  %3699 = vmatpush1.bf16.msra.mxu1 %v4997_v13  ;;  %v5084_v12 = vld [vmem:[#allocation6 + $0x9c0] ss:$16 sps:$4 sm:$0xff]   ;;  %v5087_v13 = vld [vmem:[#allocation6 + $0x9c8] ss:$16 sps:$4 sm:$0xff]  }
 0x15a   :  { %3381 = vmatprep.subr.bf16.mxu0 %v5002_v15  ;;  %3709 = vmatprep.subr.bf16.mxu1 %v5005_v16  ;;  %v5095_v15 = vld [vmem:[#allocation6 + $0x9ec] ss:$16 sps:$4 sm:$0xff]   ;;  %v5090_v16 = vld [vmem:[#allocation6 + $0x9e0] ss:$16 sps:$4 sm:$0xff]  }
 0x15c   :  { %3373 = vmatmul.mubr.bf16.vlgmr.msra.gmra.mrb[0].mxu0 %v113_v17  ;;  %3701 = vmatmul.mubr.bf16.vlgmr.msra.gmra.mrb[0].mxu1 %v113_v17  ;;  %v5093_v17 = vld [vmem:[#allocation6 + $0x9e8] ss:$16 sps:$4 sm:$0xff]  }
 0x15d   :  { %3382 = vmatpush1.bf16.msra.mxu0 %v5000_v19  ;;  %3710 = vmatpush1.bf16.msra.mxu1 %v5003_v20  ;;  %v99_v19 = vld [vmem:[#allocation3 + $0x40] sm:$0xff]  ;;  %v5101_v20 = vld [vmem:[#allocation6 + $0xa0c] ss:$16 sps:$4 sm:$0xff]  }
 0x15e   :  { %3383 = vmatprep.subr.bf16.mxu0 %v5008_v21  ;;  %3711 = vmatprep.subr.bf16.mxu1 %v5011_v22  ;;  %v102_v21 = vld [vmem:[#allocation3 + $0x58] sm:$0xff]  ;;  %v115_v22 = vpack.c.bf16 %v99_v19, %v99_v19 }
 0x15f   :  { %3413 = vmatprep.mubr.bf16.mxu0 %v116_v23  ;;  %3741 = vmatprep.mubr.bf16.mxu1 %v116_v23  ;;  %v5096_v23 = vld [vmem:[#allocation6 + $0xa00] ss:$16 sps:$4 sm:$0xff]   ;;  %v5191_v19 = vld [vmem:[#allocation6 + $0xbec] ss:$16 sps:$4 sm:$0xff]  }
 0x161   :  { %3384 = vmatpush1.bf16.msra.mxu0 %v5006_v24  ;;  %3712 = vmatpush1.bf16.msra.mxu1 %v5009_v25  ;;  %v5099_v24 = vld [vmem:[#allocation6 + $0xa08] ss:$16 sps:$4 sm:$0xff]   ;;  %v5104_v25 = vld [vmem:[#allocation6 + $0xa24] ss:$16 sps:$4 sm:$0xff]  }
 0x162   :  { %3385 = vmatprep.subr.bf16.mxu0 %v5014_v26  ;;  %3713 = vmatprep.subr.bf16.mxu1 %v5017_v27  ;;  %v5107_v26 = vld [vmem:[#allocation6 + $0xa2c] ss:$16 sps:$4 sm:$0xff]   ;;  %v118_v27 = vpack.c.bf16 %v102_v21, %v102_v21  ;;  %v5189_v21 = vld [vmem:[#allocation6 + $0xbe8] ss:$16 sps:$4 sm:$0xff]  }
 0x165   :  { %3386 = vmatpush1.bf16.msra.mxu0 %v5012_v28  ;;  %3714 = vmatpush1.bf16.msra.mxu1 %v5015_v29  ;;  %v5102_v28 = vld [vmem:[#allocation6 + $0xa20] ss:$16 sps:$4 sm:$0xff]   ;;  %v5105_v29 = vld [vmem:[#allocation6 + $0xa28] ss:$16 sps:$4 sm:$0xff]  }
 0x166   :  { %3387 = vmatprep.subr.bf16.mxu0 %v5020_v30  ;;  %3715 = vmatprep.subr.bf16.mxu1 %v5023_v31  ;;  %v5110_v30 = vld [vmem:[#allocation6 + $0xa44] ss:$16 sps:$4 sm:$0xff]   ;;  %v5113_v31 = vld [vmem:[#allocation6 + $0xa4c] ss:$16 sps:$4 sm:$0xff]  }
 0x169   :  { %3388 = vmatpush1.bf16.msra.mxu0 %v5018_v32  ;;  %3716 = vmatpush1.bf16.msra.mxu1 %v5021_v33  ;;  %v5108_v32 = vld [vmem:[#allocation6 + $0xa40] ss:$16 sps:$4 sm:$0xff]   ;;  %v5111_v33 = vld [vmem:[#allocation6 + $0xa48] ss:$16 sps:$4 sm:$0xff]  }
 0x16a   :  { %3389 = vmatprep.subr.bf16.mxu0 %v5026_v34  ;;  %3717 = vmatprep.subr.bf16.mxu1 %v5029_v35  ;;  %v5116_v34 = vld [vmem:[#allocation6 + $0xa64] ss:$16 sps:$4 sm:$0xff]   ;;  %v5119_v35 = vld [vmem:[#allocation6 + $0xa6c] ss:$16 sps:$4 sm:$0xff]  }
 0x16d   :  { %3390 = vmatpush1.bf16.msra.mxu0 %v5024_v36  ;;  %3718 = vmatpush1.bf16.msra.mxu1 %v5027_v37  ;;  %v5114_v36 = vld [vmem:[#allocation6 + $0xa60] ss:$16 sps:$4 sm:$0xff]   ;;  %v5117_v37 = vld [vmem:[#allocation6 + $0xa68] ss:$16 sps:$4 sm:$0xff]  }
 0x16e   :  { %3391 = vmatprep.subr.bf16.mxu0 %v5032_v38  ;;  %3719 = vmatprep.subr.bf16.mxu1 %v5035_v39  ;;  %v5122_v38 = vld [vmem:[#allocation6 + $0xa84] ss:$16 sps:$4 sm:$0xff]   ;;  %v5125_v39 = vld [vmem:[#allocation6 + $0xa8c] ss:$16 sps:$4 sm:$0xff]  }
 0x171   :  { %3392 = vmatpush1.bf16.msra.mxu0 %v5030_v40  ;;  %3720 = vmatpush1.bf16.msra.mxu1 %v5033_v41  ;;  %v5120_v40 = vld [vmem:[#allocation6 + $0xa80] ss:$16 sps:$4 sm:$0xff]   ;;  %v5123_v41 = vld [vmem:[#allocation6 + $0xa88] ss:$16 sps:$4 sm:$0xff]  }
 0x172   :  { %3393 = vmatprep.subr.bf16.mxu0 %v5038_v42  ;;  %3721 = vmatprep.subr.bf16.mxu1 %v5041_v43  ;;  %v5128_v42 = vld [vmem:[#allocation6 + $0xaa4] ss:$16 sps:$4 sm:$0xff]   ;;  %v5131_v43 = vld [vmem:[#allocation6 + $0xaac] ss:$16 sps:$4 sm:$0xff]  }
 0x175   :  { %3394 = vmatpush1.bf16.msra.mxu0 %v5036_v44  ;;  %3722 = vmatpush1.bf16.msra.mxu1 %v5039_v45  ;;  %v5126_v44 = vld [vmem:[#allocation6 + $0xaa0] ss:$16 sps:$4 sm:$0xff]   ;;  %v5129_v45 = vld [vmem:[#allocation6 + $0xaa8] ss:$16 sps:$4 sm:$0xff]  }
 0x176   :  { %3395 = vmatprep.subr.bf16.mxu0 %v5044_v46  ;;  %3723 = vmatprep.subr.bf16.mxu1 %v5047_v47  ;;  %v5134_v46 = vld [vmem:[#allocation6 + $0xac4] ss:$16 sps:$4 sm:$0xff]   ;;  %v5137_v47 = vld [vmem:[#allocation6 + $0xacc] ss:$16 sps:$4 sm:$0xff]  }
 0x179   :  { %3396 = vmatpush1.bf16.msra.mxu0 %v5042_v48  ;;  %3724 = vmatpush1.bf16.msra.mxu1 %v5045_v49  ;;  %v5132_v48 = vld [vmem:[#allocation6 + $0xac0] ss:$16 sps:$4 sm:$0xff]   ;;  %v5135_v49 = vld [vmem:[#allocation6 + $0xac8] ss:$16 sps:$4 sm:$0xff]  }
 0x17a   :  { %3397 = vmatprep.subr.bf16.mxu0 %v5050_v50  ;;  %3725 = vmatprep.subr.bf16.mxu1 %v5053_v51  ;;  %v5140_v50 = vld [vmem:[#allocation6 + $0xae4] ss:$16 sps:$4 sm:$0xff]   ;;  %v5143_v51 = vld [vmem:[#allocation6 + $0xaec] ss:$16 sps:$4 sm:$0xff]  }
 0x17d   :  { %3398 = vmatpush1.bf16.msra.mxu0 %v5048_v52  ;;  %3726 = vmatpush1.bf16.msra.mxu1 %v5051_v53  ;;  %v5138_v52 = vld [vmem:[#allocation6 + $0xae0] ss:$16 sps:$4 sm:$0xff]   ;;  %v5141_v53 = vld [vmem:[#allocation6 + $0xae8] ss:$16 sps:$4 sm:$0xff]  }
 0x17e   :  { %3399 = vmatprep.subr.bf16.mxu0 %v5056_v54  ;;  %3727 = vmatprep.subr.bf16.mxu1 %v5059_v55  ;;  %v5146_v54 = vld [vmem:[#allocation6 + $0xb04] ss:$16 sps:$4 sm:$0xff]   ;;  %v5149_v55 = vld [vmem:[#allocation6 + $0xb0c] ss:$16 sps:$4 sm:$0xff]  }
 0x181   :  { %3400 = vmatpush1.bf16.msra.mxu0 %v5054_v56  ;;  %3728 = vmatpush1.bf16.msra.mxu1 %v5057_v57  ;;  %v5144_v56 = vld [vmem:[#allocation6 + $0xb00] ss:$16 sps:$4 sm:$0xff]   ;;  %v5147_v57 = vld [vmem:[#allocation6 + $0xb08] ss:$16 sps:$4 sm:$0xff]  }
 0x182   :  { %3401 = vmatprep.subr.bf16.mxu0 %v5062_v58  ;;  %3729 = vmatprep.subr.bf16.mxu1 %v5065_v59  ;;  %v5152_v58 = vld [vmem:[#allocation6 + $0xb24] ss:$16 sps:$4 sm:$0xff]   ;;  %v5155_v59 = vld [vmem:[#allocation6 + $0xb2c] ss:$16 sps:$4 sm:$0xff]  }
 0x185   :  { %3402 = vmatpush1.bf16.msra.mxu0 %v5060_v60  ;;  %3730 = vmatpush1.bf16.msra.mxu1 %v5063_v61  ;;  %v5150_v60 = vld [vmem:[#allocation6 + $0xb20] ss:$16 sps:$4 sm:$0xff]   ;;  %v5153_v61 = vld [vmem:[#allocation6 + $0xb28] ss:$16 sps:$4 sm:$0xff]  }
 0x186   :  { %3403 = vmatprep.subr.bf16.mxu0 %v5068_v62  ;;  %3731 = vmatprep.subr.bf16.mxu1 %v5071_v63  ;;  %v5158_v62 = vld [vmem:[#allocation6 + $0xb44] ss:$16 sps:$4 sm:$0xff]   ;;  %v5161_v63 = vld [vmem:[#allocation6 + $0xb4c] ss:$16 sps:$4 sm:$0xff]  }
 0x189   :  { %3404 = vmatpush1.bf16.msra.mxu0 %v5066_v0  ;;  %3732 = vmatpush1.bf16.msra.mxu1 %v5069_v1  ;;  %v5156_v0 = vld [vmem:[#allocation6 + $0xb40] ss:$16 sps:$4 sm:$0xff]   ;;  %v5159_v1 = vld [vmem:[#allocation6 + $0xb48] ss:$16 sps:$4 sm:$0xff]  }
 0x18a   :  { %3405 = vmatprep.subr.bf16.mxu0 %v5074_v2  ;;  %3733 = vmatprep.subr.bf16.mxu1 %v5077_v3  ;;  %v5164_v2 = vld [vmem:[#allocation6 + $0xb64] ss:$16 sps:$4 sm:$0xff]   ;;  %v5167_v3 = vld [vmem:[#allocation6 + $0xb6c] ss:$16 sps:$4 sm:$0xff]  }
 0x18d   :  { %3406 = vmatpush1.bf16.msra.mxu0 %v5072_v4  ;;  %3734 = vmatpush1.bf16.msra.mxu1 %v5075_v5  ;;  %v5162_v4 = vld [vmem:[#allocation6 + $0xb60] ss:$16 sps:$4 sm:$0xff]   ;;  %v5165_v5 = vld [vmem:[#allocation6 + $0xb68] ss:$16 sps:$4 sm:$0xff]  }
 0x18e   :  { %3407 = vmatprep.subr.bf16.mxu0 %v5080_v6  ;;  %3735 = vmatprep.subr.bf16.mxu1 %v5083_v7  ;;  %v5170_v6 = vld [vmem:[#allocation6 + $0xb84] ss:$16 sps:$4 sm:$0xff]   ;;  %v5173_v7 = vld [vmem:[#allocation6 + $0xb8c] ss:$16 sps:$4 sm:$0xff]  }
 0x191   :  { %3408 = vmatpush1.bf16.msra.mxu0 %v5078_v8  ;;  %3736 = vmatpush1.bf16.msra.mxu1 %v5081_v9  ;;  %v5168_v8 = vld [vmem:[#allocation6 + $0xb80] ss:$16 sps:$4 sm:$0xff]   ;;  %v5171_v9 = vld [vmem:[#allocation6 + $0xb88] ss:$16 sps:$4 sm:$0xff]  }
 0x192   :  { %3409 = vmatprep.subr.bf16.mxu0 %v5086_v10  ;;  %3737 = vmatprep.subr.bf16.mxu1 %v5089_v11  ;;  %v5176_v10 = vld [vmem:[#allocation6 + $0xba4] ss:$16 sps:$4 sm:$0xff]   ;;  %v5179_v11 = vld [vmem:[#allocation6 + $0xbac] ss:$16 sps:$4 sm:$0xff]  }
 0x195   :  { %3410 = vmatpush1.bf16.msra.mxu0 %v5084_v12  ;;  %3738 = vmatpush1.bf16.msra.mxu1 %v5087_v13  ;;  %v5174_v12 = vld [vmem:[#allocation6 + $0xba0] ss:$16 sps:$4 sm:$0xff]   ;;  %v5177_v13 = vld [vmem:[#allocation6 + $0xba8] ss:$16 sps:$4 sm:$0xff]  }
 0x196   :  { %3411 = vmatprep.subr.bf16.mxu0 %v5092_v14  ;;  %3739 = vmatprep.subr.bf16.mxu1 %v5095_v15  ;;  %v5182_v14 = vld [vmem:[#allocation6 + $0xbc4] ss:$16 sps:$4 sm:$0xff]   ;;  %v5185_v15 = vld [vmem:[#allocation6 + $0xbcc] ss:$16 sps:$4 sm:$0xff]  }
 0x199   :  { %3412 = vmatpush1.bf16.msra.mxu0 %v5090_v16  ;;  %3740 = vmatpush1.bf16.msra.mxu1 %v5093_v17  ;;  %v5180_v16 = vld [vmem:[#allocation6 + $0xbc0] ss:$16 sps:$4 sm:$0xff]   ;;  %v5183_v17 = vld [vmem:[#allocation6 + $0xbc8] ss:$16 sps:$4 sm:$0xff]  }
 0x19a   :  { %3422 = vmatprep.subr.bf16.mxu0 %v5098_v18  ;;  %3750 = vmatprep.subr.bf16.mxu1 %v5101_v20  ;;  %v5188_v18 = vld [vmem:[#allocation6 + $0xbe4] ss:$16 sps:$4 sm:$0xff]   ;;  %v5186_v20 = vld [vmem:[#allocation6 + $0xbe0] ss:$16 sps:$4 sm:$0xff]  }
 0x19c   :  { %3414 = vmatmul.mubr.bf16.vlgmr.msra.gmra.mrb[0].mxu0 %v115_v22  ;;  %3742 = vmatmul.mubr.bf16.vlgmr.msra.gmra.mrb[0].mxu1 %v115_v22  ;;  %v101_v22 = vld [vmem:[#allocation3 + $0x50] sm:$0xff] }
 0x19d   :  { %3423 = vmatpush1.bf16.msra.mxu0 %v5096_v23  ;;  %3751 = vmatpush1.bf16.msra.mxu1 %v5099_v24  ;;  %v5194_v23 = vld [vmem:[#allocation6 + $0xc04] ss:$16 sps:$4 sm:$0xff]   ;;  %v5197_v24 = vld [vmem:[#allocation6 + $0xc0c] ss:$16 sps:$4 sm:$0xff]  }
 0x19e   :  { %3424 = vmatprep.subr.bf16.mxu0 %v5104_v25  ;;  %3752 = vmatprep.subr.bf16.mxu1 %v5107_v26  ;;  %v117_v25 = vpack.c.bf16 %v101_v22, %v101_v22  ;;  %v104_v26 = vld [vmem:[#allocation3 + $0x68] sm:$0xff]  ;;  %v5284_v22 = vld [vmem:[#allocation6 + $0xde4] ss:$16 sps:$4 sm:$0xff]  }
 0x19f   :  { %3454 = vmatprep.mubr.bf16.mxu0 %v118_v27  ;;  %3782 = vmatprep.mubr.bf16.mxu1 %v118_v27  ;;  %v5192_v27 = vld [vmem:[#allocation6 + $0xc00] ss:$16 sps:$4 sm:$0xff]  }
 0x1a1   :  { %3425 = vmatpush1.bf16.msra.mxu0 %v5102_v28  ;;  %3753 = vmatpush1.bf16.msra.mxu1 %v5105_v29  ;;  %v5195_v28 = vld [vmem:[#allocation6 + $0xc08] ss:$16 sps:$4 sm:$0xff]   ;;  %v5200_v29 = vld [vmem:[#allocation6 + $0xc24] ss:$16 sps:$4 sm:$0xff]  }
 0x1a2   :  { %3426 = vmatprep.subr.bf16.mxu0 %v5110_v30  ;;  %3754 = vmatprep.subr.bf16.mxu1 %v5113_v31  ;;  %v5203_v30 = vld [vmem:[#allocation6 + $0xc2c] ss:$16 sps:$4 sm:$0xff]   ;;  %v120_v31 = vpack.c.bf16 %v104_v26, %v104_v26  ;;  %v103_v26 = vld [vmem:[#allocation3 + $0x60] sm:$0xff] }
 0x1a5   :  { %3427 = vmatpush1.bf16.msra.mxu0 %v5108_v32  ;;  %3755 = vmatpush1.bf16.msra.mxu1 %v5111_v33  ;;  %v5198_v32 = vld [vmem:[#allocation6 + $0xc20] ss:$16 sps:$4 sm:$0xff]   ;;  %v5201_v33 = vld [vmem:[#allocation6 + $0xc28] ss:$16 sps:$4 sm:$0xff]  }
 0x1a6   :  { %3428 = vmatprep.subr.bf16.mxu0 %v5116_v34  ;;  %3756 = vmatprep.subr.bf16.mxu1 %v5119_v35  ;;  %v5206_v34 = vld [vmem:[#allocation6 + $0xc44] ss:$16 sps:$4 sm:$0xff]   ;;  %v5209_v35 = vld [vmem:[#allocation6 + $0xc4c] ss:$16 sps:$4 sm:$0xff]  }
 0x1a9   :  { %3429 = vmatpush1.bf16.msra.mxu0 %v5114_v36  ;;  %3757 = vmatpush1.bf16.msra.mxu1 %v5117_v37  ;;  %v5204_v36 = vld [vmem:[#allocation6 + $0xc40] ss:$16 sps:$4 sm:$0xff]   ;;  %v5207_v37 = vld [vmem:[#allocation6 + $0xc48] ss:$16 sps:$4 sm:$0xff]  }
 0x1aa   :  { %3430 = vmatprep.subr.bf16.mxu0 %v5122_v38  ;;  %3758 = vmatprep.subr.bf16.mxu1 %v5125_v39  ;;  %v5212_v38 = vld [vmem:[#allocation6 + $0xc64] ss:$16 sps:$4 sm:$0xff]   ;;  %v5215_v39 = vld [vmem:[#allocation6 + $0xc6c] ss:$16 sps:$4 sm:$0xff]  }
 0x1ad   :  { %3431 = vmatpush1.bf16.msra.mxu0 %v5120_v40  ;;  %3759 = vmatpush1.bf16.msra.mxu1 %v5123_v41  ;;  %v5210_v40 = vld [vmem:[#allocation6 + $0xc60] ss:$16 sps:$4 sm:$0xff]   ;;  %v5213_v41 = vld [vmem:[#allocation6 + $0xc68] ss:$16 sps:$4 sm:$0xff]  }
 0x1ae   :  { %3432 = vmatprep.subr.bf16.mxu0 %v5128_v42  ;;  %3760 = vmatprep.subr.bf16.mxu1 %v5131_v43  ;;  %v5218_v42 = vld [vmem:[#allocation6 + $0xc84] ss:$16 sps:$4 sm:$0xff]   ;;  %v5221_v43 = vld [vmem:[#allocation6 + $0xc8c] ss:$16 sps:$4 sm:$0xff]  }
 0x1b1   :  { %3433 = vmatpush1.bf16.msra.mxu0 %v5126_v44  ;;  %3761 = vmatpush1.bf16.msra.mxu1 %v5129_v45  ;;  %v5216_v44 = vld [vmem:[#allocation6 + $0xc80] ss:$16 sps:$4 sm:$0xff]   ;;  %v5219_v45 = vld [vmem:[#allocation6 + $0xc88] ss:$16 sps:$4 sm:$0xff]  }
 0x1b2   :  { %3434 = vmatprep.subr.bf16.mxu0 %v5134_v46  ;;  %3762 = vmatprep.subr.bf16.mxu1 %v5137_v47  ;;  %v5224_v46 = vld [vmem:[#allocation6 + $0xca4] ss:$16 sps:$4 sm:$0xff]   ;;  %v5227_v47 = vld [vmem:[#allocation6 + $0xcac] ss:$16 sps:$4 sm:$0xff]  }
 0x1b5   :  { %3435 = vmatpush1.bf16.msra.mxu0 %v5132_v48  ;;  %3763 = vmatpush1.bf16.msra.mxu1 %v5135_v49  ;;  %v5222_v48 = vld [vmem:[#allocation6 + $0xca0] ss:$16 sps:$4 sm:$0xff]   ;;  %v5225_v49 = vld [vmem:[#allocation6 + $0xca8] ss:$16 sps:$4 sm:$0xff]  }
 0x1b6   :  { %3436 = vmatprep.subr.bf16.mxu0 %v5140_v50  ;;  %3764 = vmatprep.subr.bf16.mxu1 %v5143_v51  ;;  %v5230_v50 = vld [vmem:[#allocation6 + $0xcc4] ss:$16 sps:$4 sm:$0xff]   ;;  %v5233_v51 = vld [vmem:[#allocation6 + $0xccc] ss:$16 sps:$4 sm:$0xff]  }
 0x1b9   :  { %3437 = vmatpush1.bf16.msra.mxu0 %v5138_v52  ;;  %3765 = vmatpush1.bf16.msra.mxu1 %v5141_v53  ;;  %v5228_v52 = vld [vmem:[#allocation6 + $0xcc0] ss:$16 sps:$4 sm:$0xff]   ;;  %v5231_v53 = vld [vmem:[#allocation6 + $0xcc8] ss:$16 sps:$4 sm:$0xff]  }
 0x1ba   :  { %3438 = vmatprep.subr.bf16.mxu0 %v5146_v54  ;;  %3766 = vmatprep.subr.bf16.mxu1 %v5149_v55  ;;  %v5236_v54 = vld [vmem:[#allocation6 + $0xce4] ss:$16 sps:$4 sm:$0xff]   ;;  %v5239_v55 = vld [vmem:[#allocation6 + $0xcec] ss:$16 sps:$4 sm:$0xff]  }
 0x1bd   :  { %3439 = vmatpush1.bf16.msra.mxu0 %v5144_v56  ;;  %3767 = vmatpush1.bf16.msra.mxu1 %v5147_v57  ;;  %v5234_v56 = vld [vmem:[#allocation6 + $0xce0] ss:$16 sps:$4 sm:$0xff]   ;;  %v5237_v57 = vld [vmem:[#allocation6 + $0xce8] ss:$16 sps:$4 sm:$0xff]  }
 0x1be   :  { %3440 = vmatprep.subr.bf16.mxu0 %v5152_v58  ;;  %3768 = vmatprep.subr.bf16.mxu1 %v5155_v59  ;;  %v5242_v58 = vld [vmem:[#allocation6 + $0xd04] ss:$16 sps:$4 sm:$0xff]   ;;  %v5245_v59 = vld [vmem:[#allocation6 + $0xd0c] ss:$16 sps:$4 sm:$0xff]  }
 0x1c1   :  { %3441 = vmatpush1.bf16.msra.mxu0 %v5150_v60  ;;  %3769 = vmatpush1.bf16.msra.mxu1 %v5153_v61  ;;  %v5240_v60 = vld [vmem:[#allocation6 + $0xd00] ss:$16 sps:$4 sm:$0xff]   ;;  %v5243_v61 = vld [vmem:[#allocation6 + $0xd08] ss:$16 sps:$4 sm:$0xff]  }
 0x1c2   :  { %3442 = vmatprep.subr.bf16.mxu0 %v5158_v62  ;;  %3770 = vmatprep.subr.bf16.mxu1 %v5161_v63  ;;  %v5248_v62 = vld [vmem:[#allocation6 + $0xd24] ss:$16 sps:$4 sm:$0xff]   ;;  %v5251_v63 = vld [vmem:[#allocation6 + $0xd2c] ss:$16 sps:$4 sm:$0xff]  }
 0x1c5   :  { %3443 = vmatpush1.bf16.msra.mxu0 %v5156_v0  ;;  %3771 = vmatpush1.bf16.msra.mxu1 %v5159_v1  ;;  %v5246_v0 = vld [vmem:[#allocation6 + $0xd20] ss:$16 sps:$4 sm:$0xff]   ;;  %v5249_v1 = vld [vmem:[#allocation6 + $0xd28] ss:$16 sps:$4 sm:$0xff]  }
 0x1c6   :  { %3444 = vmatprep.subr.bf16.mxu0 %v5164_v2  ;;  %3772 = vmatprep.subr.bf16.mxu1 %v5167_v3  ;;  %v5254_v2 = vld [vmem:[#allocation6 + $0xd44] ss:$16 sps:$4 sm:$0xff]   ;;  %v5257_v3 = vld [vmem:[#allocation6 + $0xd4c] ss:$16 sps:$4 sm:$0xff]  }
 0x1c9   :  { %3445 = vmatpush1.bf16.msra.mxu0 %v5162_v4  ;;  %3773 = vmatpush1.bf16.msra.mxu1 %v5165_v5  ;;  %v5252_v4 = vld [vmem:[#allocation6 + $0xd40] ss:$16 sps:$4 sm:$0xff]   ;;  %v5255_v5 = vld [vmem:[#allocation6 + $0xd48] ss:$16 sps:$4 sm:$0xff]  }
 0x1ca   :  { %3446 = vmatprep.subr.bf16.mxu0 %v5170_v6  ;;  %3774 = vmatprep.subr.bf16.mxu1 %v5173_v7  ;;  %v5260_v6 = vld [vmem:[#allocation6 + $0xd64] ss:$16 sps:$4 sm:$0xff]   ;;  %v5263_v7 = vld [vmem:[#allocation6 + $0xd6c] ss:$16 sps:$4 sm:$0xff]  }
 0x1cd   :  { %3447 = vmatpush1.bf16.msra.mxu0 %v5168_v8  ;;  %3775 = vmatpush1.bf16.msra.mxu1 %v5171_v9  ;;  %v5258_v8 = vld [vmem:[#allocation6 + $0xd60] ss:$16 sps:$4 sm:$0xff]   ;;  %v5261_v9 = vld [vmem:[#allocation6 + $0xd68] ss:$16 sps:$4 sm:$0xff]  }
 0x1ce   :  { %3448 = vmatprep.subr.bf16.mxu0 %v5176_v10  ;;  %3776 = vmatprep.subr.bf16.mxu1 %v5179_v11  ;;  %v5266_v10 = vld [vmem:[#allocation6 + $0xd84] ss:$16 sps:$4 sm:$0xff]   ;;  %v5269_v11 = vld [vmem:[#allocation6 + $0xd8c] ss:$16 sps:$4 sm:$0xff]  }
 0x1d1   :  { %3449 = vmatpush1.bf16.msra.mxu0 %v5174_v12  ;;  %3777 = vmatpush1.bf16.msra.mxu1 %v5177_v13  ;;  %v5264_v12 = vld [vmem:[#allocation6 + $0xd80] ss:$16 sps:$4 sm:$0xff]   ;;  %v5267_v13 = vld [vmem:[#allocation6 + $0xd88] ss:$16 sps:$4 sm:$0xff]  }
 0x1d2   :  { %3450 = vmatprep.subr.bf16.mxu0 %v5182_v14  ;;  %3778 = vmatprep.subr.bf16.mxu1 %v5185_v15  ;;  %v5272_v14 = vld [vmem:[#allocation6 + $0xda4] ss:$16 sps:$4 sm:$0xff]   ;;  %v5275_v15 = vld [vmem:[#allocation6 + $0xdac] ss:$16 sps:$4 sm:$0xff]  }
 0x1d5   :  { %3451 = vmatpush1.bf16.msra.mxu0 %v5180_v16  ;;  %3779 = vmatpush1.bf16.msra.mxu1 %v5183_v17  ;;  %v5270_v16 = vld [vmem:[#allocation6 + $0xda0] ss:$16 sps:$4 sm:$0xff]   ;;  %v5273_v17 = vld [vmem:[#allocation6 + $0xda8] ss:$16 sps:$4 sm:$0xff]  }
 0x1d6   :  { %3452 = vmatprep.subr.bf16.mxu0 %v5188_v18  ;;  %3780 = vmatprep.subr.bf16.mxu1 %v5191_v19  ;;  %v5278_v18 = vld [vmem:[#allocation6 + $0xdc4] ss:$16 sps:$4 sm:$0xff]   ;;  %v5281_v19 = vld [vmem:[#allocation6 + $0xdcc] ss:$16 sps:$4 sm:$0xff]  }
 0x1d9   :  { %3453 = vmatpush1.bf16.msra.mxu0 %v5186_v20  ;;  %3781 = vmatpush1.bf16.msra.mxu1 %v5189_v21  ;;  %v5276_v20 = vld [vmem:[#allocation6 + $0xdc0] ss:$16 sps:$4 sm:$0xff]   ;;  %v5279_v21 = vld [vmem:[#allocation6 + $0xdc8] ss:$16 sps:$4 sm:$0xff]  }
 0x1da   :  { %3463 = vmatprep.subr.bf16.mxu0 %v5194_v23  ;;  %3791 = vmatprep.subr.bf16.mxu1 %v5197_v24  ;;  %v5287_v23 = vld [vmem:[#allocation6 + $0xdec] ss:$16 sps:$4 sm:$0xff]   ;;  %v5282_v24 = vld [vmem:[#allocation6 + $0xde0] ss:$16 sps:$4 sm:$0xff]  }
 0x1dc   :  { %3455 = vmatmul.mubr.bf16.vlgmr.msra.gmra.mrb[0].mxu0 %v117_v25  ;;  %3783 = vmatmul.mubr.bf16.vlgmr.msra.gmra.mrb[0].mxu1 %v117_v25  ;;  %v5285_v25 = vld [vmem:[#allocation6 + $0xde8] ss:$16 sps:$4 sm:$0xff]  }
 0x1dd   :  { %3464 = vmatpush1.bf16.msra.mxu0 %v5192_v27  ;;  %3792 = vmatpush1.bf16.msra.mxu1 %v5195_v28  ;;  %v5290_v27 = vld [vmem:[#allocation6 + $0xe04] ss:$16 sps:$4 sm:$0xff]   ;;  %v5293_v28 = vld [vmem:[#allocation6 + $0xe0c] ss:$16 sps:$4 sm:$0xff]  }
 0x1de   :  { %3465 = vmatprep.subr.bf16.mxu0 %v5200_v29  ;;  %3793 = vmatprep.subr.bf16.mxu1 %v5203_v30  ;;  %v119_v29 = vpack.c.bf16 %v103_v26, %v103_v26  ;;  %v106_v30 = vld [vmem:[#allocation3 + $0x78] sm:$0xff]  ;;  %v5380_v26 = vld [vmem:[#allocation6 + $0xfe4] ss:$16 sps:$4 sm:$0xff]  }
 0x1df   :  { %3495 = vmatprep.mubr.bf16.mxu0 %v120_v31  ;;  %3823 = vmatprep.mubr.bf16.mxu1 %v120_v31  ;;  %v5288_v31 = vld [vmem:[#allocation6 + $0xe00] ss:$16 sps:$4 sm:$0xff]  }
 0x1e1   :  { %3466 = vmatpush1.bf16.msra.mxu0 %v5198_v32  ;;  %3794 = vmatpush1.bf16.msra.mxu1 %v5201_v33  ;;  %v5291_v32 = vld [vmem:[#allocation6 + $0xe08] ss:$16 sps:$4 sm:$0xff]   ;;  %v5296_v33 = vld [vmem:[#allocation6 + $0xe24] ss:$16 sps:$4 sm:$0xff]  }
 0x1e2   :  { %3467 = vmatprep.subr.bf16.mxu0 %v5206_v34  ;;  %3795 = vmatprep.subr.bf16.mxu1 %v5209_v35  ;;  %v5299_v34 = vld [vmem:[#allocation6 + $0xe2c] ss:$16 sps:$4 sm:$0xff]   ;;  %v122_v35 = vpack.c.bf16 %v106_v30, %v106_v30  ;;  %v105_v30 = vld [vmem:[#allocation3 + $0x70] sm:$0xff] }
 0x1e5   :  { %3468 = vmatpush1.bf16.msra.mxu0 %v5204_v36  ;;  %3796 = vmatpush1.bf16.msra.mxu1 %v5207_v37  ;;  %v5294_v36 = vld [vmem:[#allocation6 + $0xe20] ss:$16 sps:$4 sm:$0xff]   ;;  %v5297_v37 = vld [vmem:[#allocation6 + $0xe28] ss:$16 sps:$4 sm:$0xff]  }
 0x1e6   :  { %3469 = vmatprep.subr.bf16.mxu0 %v5212_v38  ;;  %3797 = vmatprep.subr.bf16.mxu1 %v5215_v39  ;;  %v5302_v38 = vld [vmem:[#allocation6 + $0xe44] ss:$16 sps:$4 sm:$0xff]   ;;  %v5305_v39 = vld [vmem:[#allocation6 + $0xe4c] ss:$16 sps:$4 sm:$0xff]  }
 0x1e9   :  { %3470 = vmatpush1.bf16.msra.mxu0 %v5210_v40  ;;  %3798 = vmatpush1.bf16.msra.mxu1 %v5213_v41  ;;  %v5300_v40 = vld [vmem:[#allocation6 + $0xe40] ss:$16 sps:$4 sm:$0xff]   ;;  %v5303_v41 = vld [vmem:[#allocation6 + $0xe48] ss:$16 sps:$4 sm:$0xff]  }
 0x1ea   :  { %3471 = vmatprep.subr.bf16.mxu0 %v5218_v42  ;;  %3799 = vmatprep.subr.bf16.mxu1 %v5221_v43  ;;  %v5308_v42 = vld [vmem:[#allocation6 + $0xe64] ss:$16 sps:$4 sm:$0xff]   ;;  %v5311_v43 = vld [vmem:[#allocation6 + $0xe6c] ss:$16 sps:$4 sm:$0xff]  }
 0x1ed   :  { %3472 = vmatpush1.bf16.msra.mxu0 %v5216_v44  ;;  %3800 = vmatpush1.bf16.msra.mxu1 %v5219_v45  ;;  %v5306_v44 = vld [vmem:[#allocation6 + $0xe60] ss:$16 sps:$4 sm:$0xff]   ;;  %v5309_v45 = vld [vmem:[#allocation6 + $0xe68] ss:$16 sps:$4 sm:$0xff]  }
 0x1ee   :  { %3473 = vmatprep.subr.bf16.mxu0 %v5224_v46  ;;  %3801 = vmatprep.subr.bf16.mxu1 %v5227_v47  ;;  %v5314_v46 = vld [vmem:[#allocation6 + $0xe84] ss:$16 sps:$4 sm:$0xff]   ;;  %v5317_v47 = vld [vmem:[#allocation6 + $0xe8c] ss:$16 sps:$4 sm:$0xff]  }
 0x1f1   :  { %3474 = vmatpush1.bf16.msra.mxu0 %v5222_v48  ;;  %3802 = vmatpush1.bf16.msra.mxu1 %v5225_v49  ;;  %v5312_v48 = vld [vmem:[#allocation6 + $0xe80] ss:$16 sps:$4 sm:$0xff]   ;;  %v5315_v49 = vld [vmem:[#allocation6 + $0xe88] ss:$16 sps:$4 sm:$0xff]  }
 0x1f2   :  { %3475 = vmatprep.subr.bf16.mxu0 %v5230_v50  ;;  %3803 = vmatprep.subr.bf16.mxu1 %v5233_v51  ;;  %v5320_v50 = vld [vmem:[#allocation6 + $0xea4] ss:$16 sps:$4 sm:$0xff]   ;;  %v5323_v51 = vld [vmem:[#allocation6 + $0xeac] ss:$16 sps:$4 sm:$0xff]  }
 0x1f5   :  { %3476 = vmatpush1.bf16.msra.mxu0 %v5228_v52  ;;  %3804 = vmatpush1.bf16.msra.mxu1 %v5231_v53  ;;  %v5318_v52 = vld [vmem:[#allocation6 + $0xea0] ss:$16 sps:$4 sm:$0xff]   ;;  %v5321_v53 = vld [vmem:[#allocation6 + $0xea8] ss:$16 sps:$4 sm:$0xff]  }
 0x1f6   :  { %3477 = vmatprep.subr.bf16.mxu0 %v5236_v54  ;;  %3805 = vmatprep.subr.bf16.mxu1 %v5239_v55  ;;  %v5326_v54 = vld [vmem:[#allocation6 + $0xec4] ss:$16 sps:$4 sm:$0xff]   ;;  %v5329_v55 = vld [vmem:[#allocation6 + $0xecc] ss:$16 sps:$4 sm:$0xff]  }
 0x1f9   :  { %3478 = vmatpush1.bf16.msra.mxu0 %v5234_v56  ;;  %3806 = vmatpush1.bf16.msra.mxu1 %v5237_v57  ;;  %v5324_v56 = vld [vmem:[#allocation6 + $0xec0] ss:$16 sps:$4 sm:$0xff]   ;;  %v5327_v57 = vld [vmem:[#allocation6 + $0xec8] ss:$16 sps:$4 sm:$0xff]  }
 0x1fa   :  { %3479 = vmatprep.subr.bf16.mxu0 %v5242_v58  ;;  %3807 = vmatprep.subr.bf16.mxu1 %v5245_v59  ;;  %v5332_v58 = vld [vmem:[#allocation6 + $0xee4] ss:$16 sps:$4 sm:$0xff]   ;;  %v5335_v59 = vld [vmem:[#allocation6 + $0xeec] ss:$16 sps:$4 sm:$0xff]  }
 0x1fd   :  { %3480 = vmatpush1.bf16.msra.mxu0 %v5240_v60  ;;  %3808 = vmatpush1.bf16.msra.mxu1 %v5243_v61  ;;  %v5330_v60 = vld [vmem:[#allocation6 + $0xee0] ss:$16 sps:$4 sm:$0xff]   ;;  %v5333_v61 = vld [vmem:[#allocation6 + $0xee8] ss:$16 sps:$4 sm:$0xff]  }
 0x1fe   :  { %3481 = vmatprep.subr.bf16.mxu0 %v5248_v62  ;;  %3809 = vmatprep.subr.bf16.mxu1 %v5251_v63  ;;  %v5338_v62 = vld [vmem:[#allocation6 + $0xf04] ss:$16 sps:$4 sm:$0xff]   ;;  %v5341_v63 = vld [vmem:[#allocation6 + $0xf0c] ss:$16 sps:$4 sm:$0xff]  }
 0x201   :  { %3482 = vmatpush1.bf16.msra.mxu0 %v5246_v0  ;;  %3810 = vmatpush1.bf16.msra.mxu1 %v5249_v1  ;;  %v5336_v0 = vld [vmem:[#allocation6 + $0xf00] ss:$16 sps:$4 sm:$0xff]   ;;  %v5339_v1 = vld [vmem:[#allocation6 + $0xf08] ss:$16 sps:$4 sm:$0xff]  }
 0x202   :  { %3483 = vmatprep.subr.bf16.mxu0 %v5254_v2  ;;  %3811 = vmatprep.subr.bf16.mxu1 %v5257_v3  ;;  %v5344_v2 = vld [vmem:[#allocation6 + $0xf24] ss:$16 sps:$4 sm:$0xff]   ;;  %v5347_v3 = vld [vmem:[#allocation6 + $0xf2c] ss:$16 sps:$4 sm:$0xff]  }
 0x205   :  { %3484 = vmatpush1.bf16.msra.mxu0 %v5252_v4  ;;  %3812 = vmatpush1.bf16.msra.mxu1 %v5255_v5  ;;  %v5342_v4 = vld [vmem:[#allocation6 + $0xf20] ss:$16 sps:$4 sm:$0xff]   ;;  %v5345_v5 = vld [vmem:[#allocation6 + $0xf28] ss:$16 sps:$4 sm:$0xff]  }
 0x206   :  { %3485 = vmatprep.subr.bf16.mxu0 %v5260_v6  ;;  %3813 = vmatprep.subr.bf16.mxu1 %v5263_v7  ;;  %v5350_v6 = vld [vmem:[#allocation6 + $0xf44] ss:$16 sps:$4 sm:$0xff]   ;;  %v5353_v7 = vld [vmem:[#allocation6 + $0xf4c] ss:$16 sps:$4 sm:$0xff]  }
 0x209   :  { %3486 = vmatpush1.bf16.msra.mxu0 %v5258_v8  ;;  %3814 = vmatpush1.bf16.msra.mxu1 %v5261_v9  ;;  %v5348_v8 = vld [vmem:[#allocation6 + $0xf40] ss:$16 sps:$4 sm:$0xff]   ;;  %v5351_v9 = vld [vmem:[#allocation6 + $0xf48] ss:$16 sps:$4 sm:$0xff]  }
 0x20a   :  { %3487 = vmatprep.subr.bf16.mxu0 %v5266_v10  ;;  %3815 = vmatprep.subr.bf16.mxu1 %v5269_v11  ;;  %v5356_v10 = vld [vmem:[#allocation6 + $0xf64] ss:$16 sps:$4 sm:$0xff]   ;;  %v5359_v11 = vld [vmem:[#allocation6 + $0xf6c] ss:$16 sps:$4 sm:$0xff]  }
 0x20d   :  { %3488 = vmatpush1.bf16.msra.mxu0 %v5264_v12  ;;  %3816 = vmatpush1.bf16.msra.mxu1 %v5267_v13  ;;  %v5354_v12 = vld [vmem:[#allocation6 + $0xf60] ss:$16 sps:$4 sm:$0xff]   ;;  %v5357_v13 = vld [vmem:[#allocation6 + $0xf68] ss:$16 sps:$4 sm:$0xff]  }
 0x20e   :  { %3489 = vmatprep.subr.bf16.mxu0 %v5272_v14  ;;  %3817 = vmatprep.subr.bf16.mxu1 %v5275_v15  ;;  %v5362_v14 = vld [vmem:[#allocation6 + $0xf84] ss:$16 sps:$4 sm:$0xff]   ;;  %v5365_v15 = vld [vmem:[#allocation6 + $0xf8c] ss:$16 sps:$4 sm:$0xff]  }
 0x211   :  { %3490 = vmatpush1.bf16.msra.mxu0 %v5270_v16  ;;  %3818 = vmatpush1.bf16.msra.mxu1 %v5273_v17  ;;  %v5360_v16 = vld [vmem:[#allocation6 + $0xf80] ss:$16 sps:$4 sm:$0xff]   ;;  %v5363_v17 = vld [vmem:[#allocation6 + $0xf88] ss:$16 sps:$4 sm:$0xff]  }
 0x212   :  { %3491 = vmatprep.subr.bf16.mxu0 %v5278_v18  ;;  %3819 = vmatprep.subr.bf16.mxu1 %v5281_v19  ;;  %v5368_v18 = vld [vmem:[#allocation6 + $0xfa4] ss:$16 sps:$4 sm:$0xff]   ;;  %v5371_v19 = vld [vmem:[#allocation6 + $0xfac] ss:$16 sps:$4 sm:$0xff]  }
 0x215   :  { %3492 = vmatpush1.bf16.msra.mxu0 %v5276_v20  ;;  %3820 = vmatpush1.bf16.msra.mxu1 %v5279_v21  ;;  %v5366_v20 = vld [vmem:[#allocation6 + $0xfa0] ss:$16 sps:$4 sm:$0xff]   ;;  %v5369_v21 = vld [vmem:[#allocation6 + $0xfa8] ss:$16 sps:$4 sm:$0xff]  }
 0x216   :  { %3493 = vmatprep.subr.bf16.mxu0 %v5284_v22  ;;  %3821 = vmatprep.subr.bf16.mxu1 %v5287_v23  ;;  %v5374_v22 = vld [vmem:[#allocation6 + $0xfc4] ss:$16 sps:$4 sm:$0xff]   ;;  %v5377_v23 = vld [vmem:[#allocation6 + $0xfcc] ss:$16 sps:$4 sm:$0xff]  }
 0x219   :  { %3494 = vmatpush1.bf16.msra.mxu0 %v5282_v24  ;;  %3822 = vmatpush1.bf16.msra.mxu1 %v5285_v25  ;;  %v5372_v24 = vld [vmem:[#allocation6 + $0xfc0] ss:$16 sps:$4 sm:$0xff]   ;;  %v5375_v25 = vld [vmem:[#allocation6 + $0xfc8] ss:$16 sps:$4 sm:$0xff]  }
 0x21a   :  { %3504 = vmatprep.subr.bf16.mxu0 %v5290_v27  ;;  %3832 = vmatprep.subr.bf16.mxu1 %v5293_v28  ;;  %v5383_v27 = vld [vmem:[#allocation6 + $0xfec] ss:$16 sps:$4 sm:$0xff]   ;;  %v5378_v28 = vld [vmem:[#allocation6 + $0xfe0] ss:$16 sps:$4 sm:$0xff]  }
 0x21c   :  { %3496 = vmatmul.mubr.bf16.vlgmr.msra.gmra.mrb[0].mxu0 %v119_v29  ;;  %3824 = vmatmul.mubr.bf16.vlgmr.msra.gmra.mrb[0].mxu1 %v119_v29  ;;  %v5381_v29 = vld [vmem:[#allocation6 + $0xfe8] ss:$16 sps:$4 sm:$0xff]  }
 0x21d   :  { %3505 = vmatpush1.bf16.msra.mxu0 %v5288_v31  ;;  %3833 = vmatpush1.bf16.msra.mxu1 %v5291_v32  ;;  %v121_v31 = vpack.c.bf16 %v105_v30, %v105_v30  ;;  %v5581_v32 = vmov 0.0  }
 0x21e   :  { %3506 = vmatprep.subr.bf16.mxu0 %v5296_v33  ;;  %3834 = vmatprep.subr.bf16.mxu1 %v5299_v34  ;;  %90 = vst.msk [vmem:[#allocation2] sm:$0x1] %vm89_vm0, %v5581_v32  ;;  %v637_v33 = vlaneseq }
 0x21f   :  { %3536 = vmatprep.mubr.bf16.mxu0 %v122_v35  ;;  %3864 = vmatprep.mubr.bf16.mxu1 %v122_v35 }
 0x220   :  { %v638_v34 = vshrl.u32 %v637_v33, 7 }
 0x221   :  { %3507 = vmatpush1.bf16.msra.mxu0 %v5294_v36  ;;  %3835 = vmatpush1.bf16.msra.mxu1 %v5297_v37  ;;  %v635_v37 = vld [vmem:[#allocation8] sm:$0xf] }
 0x222   :  { %3508 = vmatprep.subr.bf16.mxu0 %v5302_v38  ;;  %3836 = vmatprep.subr.bf16.mxu1 %v5305_v39  ;;  %v5687_v35 = vsub.s32 0, %v638_v34  ;;  %v647_v36 = vsub.s32 2, %v638_v34  ;;  %v643_v38 = vsub.s32 1, %v638_v34  ;;  %v651_v39 = vsub.s32 3, %v638_v34 }
 0x225   :  { %3509 = vmatpush1.bf16.msra.mxu0 %v5300_v40  ;;  %3837 = vmatpush1.bf16.msra.mxu1 %v5303_v41  ;;  %v640_v40 = vrot.slane %v635_v37, %v5687_v35  ;;  %v648_v41 = vrot.slane %v635_v37, %v647_v36 }
 0x226   :  { %3510 = vmatprep.subr.bf16.mxu0 %v5308_v42  ;;  %3838 = vmatprep.subr.bf16.mxu1 %v5311_v43  ;;  %v644_v42 = vrot.slane %v635_v37, %v643_v38  ;;  %v652_v43 = vrot.slane %v635_v37, %v651_v39 }
 0x229   :  { %3511 = vmatpush1.bf16.msra.mxu0 %v5306_v44  ;;  %3839 = vmatpush1.bf16.msra.mxu1 %v5309_v45 }
 0x22a   :  { %3512 = vmatprep.subr.bf16.mxu0 %v5314_v46  ;;  %3840 = vmatprep.subr.bf16.mxu1 %v5317_v47 }
 0x22d   :  { %3513 = vmatpush1.bf16.msra.mxu0 %v5312_v48  ;;  %3841 = vmatpush1.bf16.msra.mxu1 %v5315_v49 }
 0x22e   :  { %3514 = vmatprep.subr.bf16.mxu0 %v5320_v50  ;;  %3842 = vmatprep.subr.bf16.mxu1 %v5323_v51 }
 0x231   :  { %3515 = vmatpush1.bf16.msra.mxu0 %v5318_v52  ;;  %3843 = vmatpush1.bf16.msra.mxu1 %v5321_v53 }
 0x232   :  { %3516 = vmatprep.subr.bf16.mxu0 %v5326_v54  ;;  %3844 = vmatprep.subr.bf16.mxu1 %v5329_v55 }
 0x235   :  { %3517 = vmatpush1.bf16.msra.mxu0 %v5324_v56  ;;  %3845 = vmatpush1.bf16.msra.mxu1 %v5327_v57 }
 0x236   :  { %3518 = vmatprep.subr.bf16.mxu0 %v5332_v58  ;;  %3846 = vmatprep.subr.bf16.mxu1 %v5335_v59 }
 0x239   :  { %3519 = vmatpush1.bf16.msra.mxu0 %v5330_v60  ;;  %3847 = vmatpush1.bf16.msra.mxu1 %v5333_v61 }
 0x23a   :  { %3520 = vmatprep.subr.bf16.mxu0 %v5338_v62  ;;  %3848 = vmatprep.subr.bf16.mxu1 %v5341_v63 }
 0x23d   :  { %3521 = vmatpush1.bf16.msra.mxu0 %v5336_v0  ;;  %3849 = vmatpush1.bf16.msra.mxu1 %v5339_v1 }
 0x23e   :  { %3522 = vmatprep.subr.bf16.mxu0 %v5344_v2  ;;  %3850 = vmatprep.subr.bf16.mxu1 %v5347_v3 }
 0x241   :  { %3523 = vmatpush1.bf16.msra.mxu0 %v5342_v4  ;;  %3851 = vmatpush1.bf16.msra.mxu1 %v5345_v5 }
 0x242   :  { %3524 = vmatprep.subr.bf16.mxu0 %v5350_v6  ;;  %3852 = vmatprep.subr.bf16.mxu1 %v5353_v7 }
 0x245   :  { %3525 = vmatpush1.bf16.msra.mxu0 %v5348_v8  ;;  %3853 = vmatpush1.bf16.msra.mxu1 %v5351_v9 }
 0x246   :  { %3526 = vmatprep.subr.bf16.mxu0 %v5356_v10  ;;  %3854 = vmatprep.subr.bf16.mxu1 %v5359_v11  ;;  %v3907_v10 = vld [vmem:[#allocation9] sm:$0xf] }
 0x249   :  { %3527 = vmatpush1.bf16.msra.mxu0 %v5354_v12  ;;  %3855 = vmatpush1.bf16.msra.mxu1 %v5357_v13 }
 0x24a   :  { %3528 = vmatprep.subr.bf16.mxu0 %v5362_v14  ;;  %3856 = vmatprep.subr.bf16.mxu1 %v5365_v15 }
 0x24d   :  { %3529 = vmatpush1.bf16.msra.mxu0 %v5360_v16  ;;  %3857 = vmatpush1.bf16.msra.mxu1 %v5363_v17 }
 0x24e   :  { %3530 = vmatprep.subr.bf16.mxu0 %v5368_v18  ;;  %3858 = vmatprep.subr.bf16.mxu1 %v5371_v19  ;;  %v3912_v19 = vrot.slane %v3907_v10, %v5687_v35 }
 0x251   :  { %3531 = vmatpush1.bf16.msra.mxu0 %v5366_v20  ;;  %3859 = vmatpush1.bf16.msra.mxu1 %v5369_v21  ;;  %v3920_v20 = vrot.slane %v3907_v10, %v647_v36 }
 0x252   :  { %3532 = vmatprep.subr.bf16.mxu0 %v5374_v22  ;;  %3860 = vmatprep.subr.bf16.mxu1 %v5377_v23  ;;  %v3916_v22 = vrot.slane %v3907_v10, %v643_v38  ;;  %v5582_v38 = vmov 0  }
 0x253   :  { %4615 = vset.pattern.permute.xlu0 %v5582_v38 }
 0x255   :  { %3533 = vmatpush1.bf16.msra.mxu0 %v5372_v24  ;;  %3861 = vmatpush1.bf16.msra.mxu1 %v5375_v25 }
 0x256   :  { %3534 = vmatprep.subr.bf16.mxu0 %v5380_v26  ;;  %3862 = vmatprep.subr.bf16.mxu1 %v5383_v27 }
 0x259   :  { %3535 = vmatpush1.bf16.msra.mxu0 %v5378_v28  ;;  %3863 = vmatpush1.bf16.msra.mxu1 %v5381_v29  ;;  %v3924_v28 = vrot.slane %v3907_v10, %v651_v39 }
 0x25c   :  { %3537 = vmatmul.mubr.bf16.vlgmr.msra.gmra.mrb[0].mxu0 %v121_v31  ;;  %3865 = vmatmul.mubr.bf16.vlgmr.msra.gmra.mrb[0].mxu1 %v121_v31 }
 0x32f   :  { %v3538_v44 = vpop.f32.mrb[0].mxu0  ;;  %v3866_v45 = vpop.f32.mrb[0].mxu1 }
 0x330   :  { %v4543_v46 = vadd.f32 %v3538_v44, %v640_v40  ;;  %v4545_v47 = vadd.f32 %v3866_v45, %v648_v41  ;;  %v3540_v48 = vpop.f32.mrb[1].mxu0  ;;  %v3868_v49 = vpop.f32.mrb[1].mxu1 }
 0x331   :  { %v4544_v50 = vadd.f32 %v3540_v48, %v644_v42  ;;  %v4546_v51 = vadd.f32 %v3868_v49, %v652_v43  ;;  %v3542_v52 = vpop.f32.mrb[2].mxu0  ;;  %v3870_v53 = vpop.f32.mrb[2].mxu1  ;;  %v3906_v43 = vld [vmem:[#allocation2] sm:$0x1] }
 0x332   :  { %v3873_v54 = vmax.f32 %v4543_v46, 0.0  ;;  %v3875_v55 = vmax.f32 %v4545_v47, 0.0  ;;  %v3543_v56 = vpop.f32.mrb[3].mxu0  ;;  %v3871_v57 = vpop.f32.mrb[3].mxu1  ;;  %v3950_v46 = vld [vmem:[#allocation11] sm:$0x1] }
 0x333   :  { %v3874_v58 = vmax.f32 %v4544_v50, 0.0  ;;  %v3876_v59 = vmax.f32 %v4546_v51, 0.0 }
 0x334   :  { %v3877_v60 = vrot.slane %v3873_v54, 4  ;;  %v3889_v61 = vrot.slane %v3875_v55, 4 }
 0x335   :  { %v3883_v62 = vrot.slane %v3874_v58, 4  ;;  %v3895_v63 = vrot.slane %v3876_v59, 4 }
 0x336   :  { %v3878_v0 = vadd.f32 %v3877_v60, %v3873_v54  ;;  %v3890_v1 = vadd.f32 %v3889_v61, %v3875_v55 }
 0x337   :  { %v3884_v2 = vadd.f32 %v3883_v62, %v3874_v58  ;;  %v3896_v3 = vadd.f32 %v3895_v63, %v3876_v59 }
 0x338   :  { %v3879_v4 = vrot.slane %v3878_v0, 2  ;;  %v3891_v5 = vrot.slane %v3890_v1, 2 }
 0x339   :  { %v3885_v6 = vrot.slane %v3884_v2, 2  ;;  %v3897_v7 = vrot.slane %v3896_v3, 2 }
 0x33a   :  { %v3880_v8 = vadd.f32 %v3879_v4, %v3878_v0  ;;  %v3892_v9 = vadd.f32 %v3891_v5, %v3890_v1 }
 0x33b   :  { %v3886_v11 = vadd.f32 %v3885_v6, %v3884_v2  ;;  %v3898_v12 = vadd.f32 %v3897_v7, %v3896_v3 }
 0x33c   :  { %v3881_v13 = vrot.slane %v3880_v8, 1  ;;  %v3893_v14 = vrot.slane %v3892_v9, 1 }
 0x33d   :  { %v3887_v15 = vrot.slane %v3886_v11, 1  ;;  %v3899_v16 = vrot.slane %v3898_v12, 1 }
 0x33e   :  { %v3882_v17 = vadd.f32 %v3881_v13, %v3880_v8  ;;  %v3894_v18 = vadd.f32 %v3893_v14, %v3892_v9 }
 0x33f   :  { %v3888_v21 = vadd.f32 %v3887_v15, %v3886_v11  ;;  %v3900_v23 = vadd.f32 %v3899_v16, %v3898_v12 }
 0x340   :  { %v3902_v24 = vmul.f32 0.125, %v3882_v17  ;;  %v3904_v25 = vmul.f32 0.125, %v3894_v18 }
 0x341   :  { %v3903_v26 = vmul.f32 0.125, %v3888_v21  ;;  %v3905_v27 = vmul.f32 0.125, %v3900_v23 }
 0x342   :  { %v3929_v29 = vmul.f32 %v3912_v19, %v3902_v24  ;;  %v3931_v31 = vmul.f32 %v3920_v20, %v3904_v25 }
 0x343   :  { %v3930_v30 = vmul.f32 %v3916_v22, %v3903_v26  ;;  %v3932_v33 = vmul.f32 %v3924_v28, %v3905_v27 }
 0x344   :  { %v3934_v32 = vsel %vm3933_vm1, %v3929_v29, 0.0  ;;  %v3937_v40 = vsel %vm3933_vm1, %v3931_v31, 0.0 }
 0x345   :  { %v3935_v34 = vsel %vm3933_vm1, %v3930_v30, 0.0  ;;  %v3939_v42 = vsel %vm3933_vm1, %v3932_v33, 0.0 }
 0x346   :  { %v3936_v37 = vadd.f32 %v3935_v34, %v3934_v32 }
 0x348   :  { %v3938_v41 = vadd.f32 %v3937_v40, %v3936_v37 }
 0x34a   :  { %v3940_v36 = vadd.f32 %v3939_v42, %v3938_v41 }
 0x34c   :  { %3941 = vadd.xlane.f32.xlu0 %v3940_v36 }
 0x3d9   :  { %v3942_v44 = vpop.xlane.xlu0 %3941 }
 0x3da   :  { %v3943_v45 = vadd.f32 %v3942_v44, %v3906_v43 }
 0x3dc   :  { %3945 = vst.msk [vmem:[#allocation2] sm:$0x1] %vm89_vm0, %v3943_v45 }
 0x3e3   :  { %v3949_v39 = vld [vmem:[#allocation2] sm:$0x1] }
 0x3e4   :  { %3953 = vperm.xlu0 %4615, %v3949_v39  }
 0x463   :  { %v3954_v47 = vpop.permute.xlu0 %3953 }
 0x464   :  { %v3959_v48 = vrot.slane %v3954_v47, %v5687_v35 }
 0x466   :  { %v3960_v49 = vadd.f32 %v3959_v48, %v3950_v46 }
 0x468   :  { %v4542_v50 = vmul.f32 -1.442695, %v3960_v49  ;;  %3968 = vst.msk [vmem:[#allocation12] sm:$0x1] %vm3967_vm2, %v3960_v49 }
 0x46a   :  { %5384 = vpow2.f32 %v4542_v50 }
 0x474   :  { %v5385_v51 = vpop.eup %5384 }
 0x475   :  { %v3964_v52 = vadd.f32 1.0, %v5385_v51 }
 0x477   :  { %5386 = vrcp.f32 %v3964_v52 }
 0x481   :  { %v5387_v53 = vpop.eup %5386 }
 0x482   :  { %vm3970_vm3 = vcmp.gt.f32.partialorder %v5387_v53, 0.5  ;;  %3969 = vst.msk [vmem:[#allocation13] sm:$0x1] %vm3967_vm2, %v5387_v53 }
 0x483   :  { %v3971_v54 = vsel %vm3970_vm3, 1, %v5582_v38 }
 0x484   :  { %v3972_v55 = vsel %vm3967_vm2, %v3971_v54, 0 }
 0x485   :  { %v3974_v56 = vshrl.u32 %v3972_v55, 16  ;;  %v3973_v58 = vand.u32 65535, %v3972_v55 }
 0x487   :  { %v3976_v57 = vcvt.s32.f32 %v3974_v56  ;;  %v3975_v59 = vcvt.s32.f32 %v3973_v58 }
 0x489   :  { %3979 = vadd.xlane.f32.xlu1 %v3976_v57 }
 0x48d   :  { %3977 = vadd.xlane.f32.xlu1 %v3975_v59 }
 0x48e   :  { %5509 = shalt.err (!%p5506_p2)
}
 0x48f   :  { %s5510_s20 = scalar_lea.hbm %s5736_s6, 16 }
 0x490   :  { %p5511_p3 = scmp.ne.s32.totalorder %s5736_s6, %s5510_s20  ;;  %p5514_p4 = scmp.lt.u32.totalorder %s5510_s20, %s5736_s6 }
 0x492   :  { %p5516_p5 = pnand %p5514_p4, %p5511_p3 }
 0x494   :  { %5519 = shalt.err (!%p5516_p5)
}
 0x495   :  { %4005 = dma.vmem_to_hbm [thread:$0]  %s4003_s3, 16, %s5736_s6, [#allocation14]  }
 0x496   :  { %s5520_s18 = scalar_lea.vmem %s3993_s14, 16  ;;  %s5524_s1 = scalar_lea.vmem %s3993_s14, 32 }
 0x497   :  { %p5521_p6 = scmp.ne.s32.totalorder %s3993_s14, %s5520_s18  ;;  %p5525_p7 = scmp.lt.s32.totalorder %s3993_s14, %s3993_s14 }
 0x498   :  { %p5526_p8 = scmp.lt.s32.totalorder %s5524_s1, %s5520_s18 }
 0x49a   :  { %p5527_p9 = por %p5526_p8, %p5525_p7 }
 0x49c   :  { %p5528_p10 = pnand %p5527_p9, %p5521_p6 }
 0x49e   :  { %5531 = shalt.err (!%p5528_p10)
}
 0x49f   :  { %s5532_s28 = scalar_lea.hbm %s5735_s5, 16 }
 0x4a0   :  { %p5533_p11 = scmp.ne.s32.totalorder %s5735_s5, %s5532_s28  ;;  %p5536_p12 = scmp.lt.u32.totalorder %s5532_s28, %s5735_s5 }
 0x4a2   :  { %p5538_p13 = pnand %p5536_p12, %p5533_p11 }
 0x4a4   :  { %5541 = shalt.err (!%p5538_p13)
}
 0x4a5   :  { %3995 = dma.vmem_to_hbm [thread:$0]  %s3993_s14, 16, %s5735_s5, [#allocation5]  }
 0x4a6   :  { %s5585_s11 = smov [#allocation15]  }
 0x4a7   :  { %s4012_s2 = sshll.u32 %s5585_s11, 4  ;;  %s4013_s2 = int_to_ptr.vmem [resolvable:$true] %s4012_s2 }
 0x4a8   :  { %s5542_s12 = scalar_lea.vmem %s4013_s2, 16  ;;  %s5546_s4 = scalar_lea.vmem %s4013_s2, 32 }
 0x4a9   :  { %p5543_p0 = scmp.ne.s32.totalorder %s4013_s2, %s5542_s12  ;;  %p5547_p1 = scmp.lt.s32.totalorder %s4013_s2, %s4013_s2 }
 0x4aa   :  { %p5548_p2 = scmp.lt.s32.totalorder %s5546_s4, %s5542_s12 }
 0x4ac   :  { %p5549_p3 = por %p5548_p2, %p5547_p1 }
 0x4ae   :  { %p5550_p4 = pnand %p5549_p3, %p5543_p0 }
 0x516   :  { %v3980_v35 = vpop.xlane.xlu1 %3979 }
 0x517   :  { %v3982_v60 = vcvt.f32.s32 %v3980_v35 }
 0x519   :  { %v3983_v62 = vshll.u32 %v3982_v60, 16 }
 0x51a   :  { %v3978_v61 = vpop.xlane.xlu1 %3977 }
 0x51b   :  { %v3981_v63 = vcvt.f32.s32 %v3978_v61 }
 0x51d   :  { %v3984_v0 = vadd.s32 %v3983_v62, %v3981_v63 }
 0x51f   :  { %3985 = vst.msk [vmem:[#allocation15] sm:$0x1] %vm89_vm0, %v3984_v0 }
 0x520   :  { %5553 = shalt.err (!%p5550_p4)
}
 0x521   :  { %s5554_s13 = scalar_lea.hbm %s5737_s7, 16 }
 0x522   :  { %p5555_p5 = scmp.ne.s32.totalorder %s5737_s7, %s5554_s13  ;;  %p5558_p6 = scmp.lt.u32.totalorder %s5554_s13, %s5737_s7 }
 0x524   :  { %p5560_p7 = pnand %p5558_p6, %p5555_p5 }
 0x526   :  { %5563 = shalt.err (!%p5560_p7)
}
 0x527   :  { %4015 = dma.vmem_to_hbm [thread:$0]  %s4013_s2, 16, %s5737_s7, [#allocation14]  }
 0x528   :  { %5570 = dma.done.wait [#allocation5], 16  }
 0x529   :  { %5571 = vsyncadd [#allocation5], 4294967280 }
 0x52a   :  { %5572 = dma.done.wait [#allocation14], 32  }
 0x52b   :  { %5573 = vsyncadd [#allocation14], 4294967264 }
 0x52c   :  { %4025 = vsyncpa [#allocation4], 1 }
 0x52d   :  { %4026 = vsyncpa [#allocation7], 1 }
 0x52e   :  { %4027 = vsyncpa [#allocation10], 1 }
 0x52f   :  { %4028 = vsyncpa [#allocation5], 1 }
 0x530   :  { %4029 = vsyncpa [#allocation14], 1 }

</bundles_post_ra>
